<compile_context>
chip_gen: v5e
topology: v5e:2x2
jax: 0.10.0
libtpu: 0.0.40
codegen_flags: <defaults>
</compile_context>

<pallas_src>
import functools

import jax
import jax.numpy as jnp
from jax import lax
from jax.experimental import pallas as pl
from jax.experimental.pallas import tpu as pltpu


# ----------------------------------------------------------------------------
# Small helpers
# ----------------------------------------------------------------------------
def _round_up(x, m):
    return ((x + m - 1) // m) * m


def _cdiv(a, b):
    return (a + b - 1) // b


def _largest_divisor_leq(n, cap):
    for d in range(min(n, cap), 0, -1):
        if n % d == 0:
            return d
    return 1


def _tpu_generation_info():
    """(physical VMEM bytes, MXU rows). Conservative defaults if the query fails."""
    vmem = 64 * 1024 * 1024            # v7x per-TC VMEM (smallest current gen)
    try:
        vmem = int(pltpu.get_tpu_info().vmem_capacity_bytes)
    except Exception:
        pass
    mxu_rows = 256                     # v6e / v7x
    try:
        kind = jax.devices()[0].device_kind.lower()
        if any(v in kind for v in ("v2", "v3", "v4", "v5")):
            mxu_rows = 128             # 128-tall MXUs
    except Exception:
        pass
    return vmem, mxu_rows


def _vmem_need_bytes(t_s, t_b, I, Hp, x_itm, w_itm):
    """Honest per-kernel VMEM accounting for the chosen tiling."""
    x_tile = 2 * t_s * t_b * I * x_itm          # double-buffered streamed x tile
    weights = (I + Hp) * 4 * Hp * w_itm         # Wx + Wh, single-buffered
    bias = 4 * Hp * 4                           # f32 bias row
    state = 2 * 2 * t_b * Hp * 4                # h/c resident output blocks (x2 margin)
    zx_scr = t_s * t_b * 4 * Hp * 4             # VMEM scratch holding the projection
    zx_tmp = t_s * t_b * 4 * Hp * 4             # projection value before the scratch store
    x_copy = t_s * t_b * I * x_itm              # reshape copy of the x tile
    return x_tile + weights + bias + state + zx_scr + zx_tmp + x_copy


# ----------------------------------------------------------------------------
# Kernel
# ----------------------------------------------------------------------------
def _lstm_kernel(x_ref, wx_ref, wh_ref, b_ref, h_ref, c_ref, zx_ref,
                 *, seq_len, needs_mask, unroll):
    """One grid step = one (batch tile, time tile).

    x_ref : (t_s, t_b, I)      streamed per grid step (double-buffered)
    wx_ref: (I,  4*Hp)         resident, single-buffered
    wh_ref: (Hp, 4*Hp)         resident, single-buffered
    b_ref : (1,  4*Hp)         resident f32 bias, single-buffered
    h_ref : (t_b, Hp)          output, resident across the time axis (state)
    c_ref : (t_b, Hp)          output, resident across the time axis (state)
    zx_ref: (t_s, t_b, 4*Hp)   VMEM scratch for the hoisted input projection
    Gate column order inside the padded weights is [i, f, o, g].
    """
    t_s, t_b, i_sz = x_ref.shape
    hp = h_ref.shape[1]

    # Fresh state at the first time tile of every batch tile (accumulator
    # pattern: h/c output blocks are resident across the 'arbitrary' time axis).
    @pl.when(pl.program_id(1) == 0)
    def _():
        h_ref[...] = jnp.zeros_like(h_ref)
        c_ref[...] = jnp.zeros_like(c_ref)

    # ---- Phase 1: hoisted input projection for the whole time tile.
    # One MXU matmul with M = t_s * t_b rows; bias folded in exactly once.
    # t_b % 8 == 0 makes the (t_s, t_b, I) <-> (t_s*t_b, I) reshapes free.
    x_blk = x_ref[...].reshape(t_s * t_b, i_sz)
    zx = jnp.dot(x_blk, wx_ref[...], preferred_element_type=jnp.float32)
    zx_ref[...] = (zx + b_ref[...]).reshape(t_s, t_b, 4 * hp)

    # TODO(synk): software-pipeline the NEXT tile's projection against this
    # tile's recurrence (split-tile zx prefetch) if profiling shows the MXU
    # idling under the EUP-bound recurrence.
    # TODO(synk): for very large Hp on v7x, stream Wh gate-column blocks from
    # HBM with a manual double-buffer instead of holding it resident.

    wh = wh_ref[...]
    tile_start = pl.program_id(1) * t_s

    # ---- Phase 2: serial recurrence. Only h @ Wh + gate math per step.
    def step(t, carry):
        h, c = carry
        z = zx_ref[t] + jnp.dot(h.astype(wh.dtype), wh,
                                preferred_element_type=jnp.float32)
        # [i, f, o, g] packing: one sigmoid over the contiguous 3*hp block,
        # one tanh over the last hp block (lane-aligned since hp % 128 == 0).
        sig = jax.nn.sigmoid(z[:, :3 * hp])
        i_g = sig[:, 0 * hp:1 * hp]
        f_g = sig[:, 1 * hp:2 * hp]
        o_g = sig[:, 2 * hp:3 * hp]
        g_g = jnp.tanh(z[:, 3 * hp:])
        c_new = f_g * c + i_g * g_g
        h_new = o_g * jnp.tanh(c_new)
        if needs_mask:
            valid = (tile_start + t) < seq_len     # padded tail steps are no-ops
            h_new = jnp.where(valid, h_new, h)
            c_new = jnp.where(valid, c_new, c)
        return h_new, c_new

    # Partially-unrolled fori_loop: bounds live ranges (a full Python unroll
    # blows the 64-vreg file at realistic t_b * Hp) while still letting the
    # scheduler overlap MXU result pops with gate math.
    h, c = lax.fori_loop(0, t_s, step, (h_ref[...], c_ref[...]), unroll=unroll)

    # Write running state back once per grid step (not once per timestep).
    h_ref[...] = h
    c_ref[...] = c


# ----------------------------------------------------------------------------
# Parameter packing (do once, reuse across calls)
# ----------------------------------------------------------------------------
def pack_params(wx, wh, b, *, matmul_dtype=None):
    """Pad the hidden size to a multiple of 128 and repack the [i, f, g, o]
    column blocks into [i, f, o, g] order with stride Hp, so every gate is a
    lane-aligned column block and the sigmoid gates are contiguous.

    NOTE: padded rows/columns of Wh and padded bias lanes MUST stay exactly
    zero — then padded hidden lanes evolve as c <- sigmoid(0)*c starting from
    0, i.e. stay 0 forever, and never leak into real lanes.
    """
    I, four_h = wx.shape
    H = four_h // 4
    assert wh.shape == (H, 4 * H) and b.shape == (1, 4 * H)
    Hp = _round_up(H, 128)
    src_for_dst = (0, 1, 3, 2)          # dst [i, f, o, g]  <-  src [i, f, g, o]

    wx_p = jnp.zeros((I, 4 * Hp), jnp.float32)
    wh_p = jnp.zeros((Hp, 4 * Hp), jnp.float32)
    b_p = jnp.zeros((1, 4 * Hp), jnp.float32)
    for p, g in enumerate(src_for_dst):
        wx_p = wx_p.at[:, p * Hp:p * Hp + H].set(wx[:, g * H:(g + 1) * H])
        wh_p = wh_p.at[:H, p * Hp:p * Hp + H].set(wh[:, g * H:(g + 1) * H])
        b_p = b_p.at[:, p * Hp:p * Hp + H].set(b[:, g * H:(g + 1) * H])

    if matmul_dtype is not None:
        # bf16 operands are a win on every generation (f32 accumulation and
        # f32 h/c state are kept inside the kernel).
        wx_p = wx_p.astype(matmul_dtype)
        wh_p = wh_p.astype(matmul_dtype)
    return wx_p, wh_p, b_p


# ----------------------------------------------------------------------------
# Forward wrapper
# ----------------------------------------------------------------------------
@functools.partial(jax.jit,
                   static_argnames=("hidden_size", "time_tile", "matmul_dtype"))
def lstm_forward(x, wx_p, wh_p, b_p, *, hidden_size, time_tile=None,
                 matmul_dtype=None):
    """x: (B, S, I) f32; packed params from pack_params(); returns (h_T, c_T),
    each (B, hidden_size) f32, matching the PyTorch module with zero initial
    states."""
    B, S, I = x.shape
    Hp = wh_p.shape[0]
    H = hidden_size
    assert wx_p.shape == (I, 4 * Hp)
    assert wh_p.shape == (Hp, 4 * Hp)
    assert b_p.shape == (1, 4 * Hp)
    assert 0 < H <= Hp

    if matmul_dtype is not None:
        x = x.astype(matmul_dtype)

    # ---- Batch tiling (megacore-aware, no wasteful rounding to 128). ----
    Bp_min = _round_up(B, 8)
    n_bt = max(1, _cdiv(Bp_min, 128))
    if n_bt == 1 and Bp_min >= 16:
        n_bt = 2                               # let the 2nd TC (v7x) own half the batch
    t_b = _round_up(_cdiv(Bp_min, n_bt), 8)
    Bp = t_b * n_bt

    # ---- Generation-aware time tiling + honest VMEM budget. ----
    vmem_cap, mxu_rows = _tpu_generation_info()
    budget = (vmem_cap * 3) // 4               # ~48 MiB on v7x, ~96 MiB on v5e/v6e
    x_itm = jnp.dtype(x.dtype).itemsize
    w_itm = jnp.dtype(wx_p.dtype).itemsize

    if time_tile is None:
        # Feed the MXU: M = t_s * t_b >= mxu_rows, but never bigger than needed
        # for the sequence, and shrink until the tile fits the VMEM budget.
        t_s = max(8, _round_up(_cdiv(mxu_rows, t_b), 8))
        t_s = min(t_s, _round_up(S, 8))
        while t_s > 8 and _vmem_need_bytes(t_s, t_b, I, Hp, x_itm, w_itm) > budget:
            t_s = max(8, (t_s // 16) * 8)
    else:
        t_s = int(time_tile)
        assert t_s >= 1

    Sp = _round_up(S, t_s)                     # pad the sequence; tail is masked
    n_tt = Sp // t_s
    needs_mask = (Sp != S)

    need = _vmem_need_bytes(t_s, t_b, I, Hp, x_itm, w_itm)
    vmem_limit = int(min(budget, max(int(need * 1.25) + (1 << 20), 16 << 20)))

    # Pad batch/sequence with zeros (padded batch rows are discarded at the
    # end; padded time steps are masked inside the kernel) and go time-major so
    # each grid step streams a contiguous (t_s, t_b, I) tile and every
    # per-timestep read inside the kernel is a free leading-axis index.
    # TODO(synk): stream x directly in (B, S, I) layout (saves one HBM copy of
    # x) — needs an in-kernel relayout of either the x tile or the zx slab.
    x_pad = jnp.pad(x, ((0, Bp - B), (0, Sp - S), (0, 0)))
    x_tm = jnp.transpose(x_pad, (1, 0, 2))     # (Sp, Bp, I)

    unroll = _largest_divisor_leq(t_s, 8)
    kernel = functools.partial(_lstm_kernel, seq_len=S, needs_mask=needs_mask,
                               unroll=unroll)

    grid = (n_bt, n_tt)                        # (batch tiles: parallel, time: arbitrary)

    h_p, c_p = pl.pallas_call(
        kernel,
        out_shape=(jax.ShapeDtypeStruct((Bp, Hp), jnp.float32),
                   jax.ShapeDtypeStruct((Bp, Hp), jnp.float32)),
        grid_spec=pltpu.PrefetchScalarGridSpec(
            num_scalar_prefetch=0,
            grid=grid,
            in_specs=[
                # Streamed x tile: double-buffered by the pipeline.
                pl.BlockSpec((t_s, t_b, I), lambda bi, si: (si, bi, 0)),
                # Resident weights/bias: constant index_map + single buffer.
                pl.BlockSpec((I, 4 * Hp), lambda bi, si: (0, 0),
                             pipeline_mode=pl.Buffered(1)),
                pl.BlockSpec((Hp, 4 * Hp), lambda bi, si: (0, 0),
                             pipeline_mode=pl.Buffered(1)),
                pl.BlockSpec((1, 4 * Hp), lambda bi, si: (0, 0),
                             pipeline_mode=pl.Buffered(1)),
            ],
            out_specs=(
                pl.BlockSpec((t_b, Hp), lambda bi, si: (bi, 0)),
                pl.BlockSpec((t_b, Hp), lambda bi, si: (bi, 0)),
            ),
            scratch_shapes=[pltpu.VMEM((t_s, t_b, 4 * Hp), jnp.float32)],
        ),
        compiler_params=pltpu.CompilerParams(
            dimension_semantics=("parallel", "arbitrary"),
            vmem_limit_bytes=vmem_limit),
    )(x_tm, wx_p, wh_p, b_p)

    return h_p[:B, :H], c_p[:B, :H]


# ----------------------------------------------------------------------------
# Parameter init (mirrors the PyTorch module) and pure-JAX reference
# ----------------------------------------------------------------------------
def _xavier_uniform(key, shape):
    fan_in, fan_out = shape[0], shape[1]
    limit = jnp.sqrt(6.0 / (fan_in + fan_out))
    return jax.random.uniform(key, shape, jnp.float32, -limit, limit)


def make_params(key, input_size, hidden_size):
    """Mirror init_hidden(): xavier_uniform_ for 2-D weights, zeros for 1-D
    biases. Gate order [i, f, g, o], packed along columns."""
    keys = jax.random.split(key, 8)
    W_x = [_xavier_uniform(keys[g], (input_size, hidden_size)) for g in range(4)]
    W_h = [_xavier_uniform(keys[4 + g], (hidden_size, hidden_size)) for g in range(4)]
    b_x = [jnp.zeros((hidden_size,), jnp.float32) for _ in range(4)]
    b_h = [jnp.zeros((hidden_size,), jnp.float32) for _ in range(4)]

    wx = jnp.concatenate(W_x, axis=1)                       # (I, 4H)
    wh = jnp.concatenate(W_h, axis=1)                       # (H, 4H)
    b = jnp.concatenate([bx + bh for bx, bh in zip(b_x, b_h)], axis=0)[None, :]
    return wx, wh, b


def lstm_reference(x, wx, wh, b):
    """Pure-JAX reference mirroring the PyTorch loop exactly ([i,f,g,o])."""
    B, S, _ = x.shape
    H = wh.shape[0]
    h = jnp.zeros((B, H), jnp.float32)
    c = jnp.zeros((B, H), jnp.float32)
    for t in range(S):
        z = x[:, t, :] @ wx + h @ wh + b
        i_t = jax.nn.sigmoid(z[:, 0 * H:1 * H])
        f_t = jax.nn.sigmoid(z[:, 1 * H:2 * H])
        g_t = jnp.tanh(z[:, 2 * H:3 * H])
        o_t = jax.nn.sigmoid(z[:, 3 * H:4 * H])
        c = f_t * c + i_t * g_t
        h = o_t * jnp.tanh(c)
    return h, c


if __name__ == "__main__":
    batch, seq, input_size, hidden_size = 2, 8, 16, 32

    key = jax.random.PRNGKey(0)
    k_x, k_w = jax.random.split(key)
    x = jax.random.normal(k_x, (batch, seq, input_size), jnp.float32)
    wx, wh, b = make_params(k_w, input_size, hidden_size)

    # Pack / pad the weights ONCE and reuse across calls (review: hoist packing
    # out of the per-call path). f32 operands here so the check is tight; pass
    # matmul_dtype=jnp.bfloat16 to pack_params/lstm_forward for production.
    packed = pack_params(wx, wh, b)

    # Run 1: auto time tile (single time tile for this short sequence).
    h1, c1 = lstm_forward(x, *packed, hidden_size=hidden_size)
    # Run 2: time_tile=5 -> padded sequence (Sp=10), 2 time tiles. Exercises
    # the resident-state carry across grid steps AND the tail-masking path.
    h2, c2 = lstm_forward(x, *packed, hidden_size=hidden_size, time_tile=5)
    jax.block_until_ready((h1, c1, h2, c2))

    h_ref, c_ref = lstm_reference(x, wx, wh, b)
    for h_t, c_t in ((h1, c1), (h2, c2)):
        assert h_t.shape == (batch, hidden_size)
        assert c_t.shape == (batch, hidden_size)
        assert jnp.allclose(h_t, h_ref, atol=1e-5, rtol=1e-5)
        assert jnp.allclose(c_t, c_ref, atol=1e-5, rtol=1e-5)

    print("KERNEL_OK")
</pallas_src>

<mosaic_0001>
module attributes {stable_mosaic.version = 11 : i64} {
  func.func @_lstm_kernel(%arg0: i32, %arg1: i32, %arg2: memref<8x8x16xf32, #tpu.memory_space<vmem>>, %arg3: memref<16x512xf32, #tpu.memory_space<vmem>>, %arg4: memref<128x512xf32, #tpu.memory_space<vmem>>, %arg5: memref<1x512xf32, #tpu.memory_space<vmem>>, %arg6: memref<8x128xf32, #tpu.memory_space<vmem>>, %arg7: memref<8x128xf32, #tpu.memory_space<vmem>>, %arg8: memref<8x8x512xf32, #tpu.memory_space<vmem>>) attributes {dimension_semantics = [#tpu.dimension_semantics<parallel>, #tpu.dimension_semantics<arbitrary>], iteration_bounds = array<i64: 1, 1>, scalar_prefetch = 0 : i64, scratch_operands = 1 : i64, tpu.core_type = #tpu.core_type<tc>, window_params = [{transform_indices = @transform_0, window_bounds = array<i64: 8, 8, 16>}, {pipeline_mode = #tpu.pipeline_mode<synchronous>, transform_indices = @transform_1, window_bounds = array<i64: 16, 512>}, {pipeline_mode = #tpu.pipeline_mode<synchronous>, transform_indices = @transform_2, window_bounds = array<i64: 128, 512>}, {pipeline_mode = #tpu.pipeline_mode<synchronous>, transform_indices = @transform_3, window_bounds = array<i64: 1, 512>}, {transform_indices = @transform_4, window_bounds = array<i64: 8, 128>}, {transform_indices = @transform_5, window_bounds = array<i64: 8, 128>}]} {
    %c0_i32 = arith.constant 0 : i32
    %0 = arith.cmpi eq, %arg1, %c0_i32 : i32
    %1 = arith.extui %0 : i1 to i32
    %c0_i32_0 = arith.constant 0 : i32
    %2 = arith.cmpi ne, %1, %c0_i32_0 : i32
    scf.if %2 {
      %cst_53 = arith.constant 0.000000e+00 : f32
      %185 = vector.broadcast %cst_53 : f32 to vector<8x128xf32>
      %c0_54 = arith.constant 0 : index
      %c0_55 = arith.constant 0 : index
      %186 = vector.load %arg6[%c0_54, %c0_55] : memref<8x128xf32, #tpu.memory_space<vmem>>, vector<8x128xf32>
      tpu.vector_store %arg6[%c0_54, %c0_55], %185 {strides = array<i32>} : memref<8x128xf32, #tpu.memory_space<vmem>>, vector<8x128xf32>,
      %cst_56 = arith.constant 0.000000e+00 : f32
      %187 = vector.broadcast %cst_56 : f32 to vector<8x128xf32>
      %c0_57 = arith.constant 0 : index
      %c0_58 = arith.constant 0 : index
      %188 = vector.load %arg7[%c0_57, %c0_58] : memref<8x128xf32, #tpu.memory_space<vmem>>, vector<8x128xf32>
      tpu.vector_store %arg7[%c0_57, %c0_58], %187 {strides = array<i32>} : memref<8x128xf32, #tpu.memory_space<vmem>>, vector<8x128xf32>,
    } else {
    }
    %c0 = arith.constant 0 : index
    %c0_1 = arith.constant 0 : index
    %c0_2 = arith.constant 0 : index
    %3 = vector.load %arg2[%c0, %c0_1, %c0_2] : memref<8x8x16xf32, #tpu.memory_space<vmem>>, vector<8x8x16xf32>
    %4 = vector.shape_cast %3 : vector<8x8x16xf32> to vector<64x16xf32>
    %c0_3 = arith.constant 0 : index
    %c0_4 = arith.constant 0 : index
    %5 = vector.load %arg3[%c0_3, %c0_4] : memref<16x512xf32, #tpu.memory_space<vmem>>, vector<16x512xf32>
    %cst = arith.constant dense<0.000000e+00> : vector<64x512xf32>
    %6 = tpu.matmul %4, %5, %cst {dimension_numbers = #tpu.dot_dimension_numbers<[1], [0], [0], [1], [0, 0, 1, 1], [], []>} : vector<64x16xf32>, vector<16x512xf32>, vector<64x512xf32> -> vector<64x512xf32>
    %c0_5 = arith.constant 0 : index
    %c0_6 = arith.constant 0 : index
    %7 = vector.load %arg5[%c0_5, %c0_6] : memref<1x512xf32, #tpu.memory_space<vmem>>, vector<1x512xf32>
    %8 = vector.broadcast %7 : vector<1x512xf32> to vector<64x512xf32>
    %9 = arith.addf %6, %8 : vector<64x512xf32>
    %10 = vector.shape_cast %9 : vector<64x512xf32> to vector<8x8x512xf32>
    %c0_7 = arith.constant 0 : index
    %c0_8 = arith.constant 0 : index
    %c0_9 = arith.constant 0 : index
    %11 = vector.load %arg8[%c0_7, %c0_8, %c0_9] : memref<8x8x512xf32, #tpu.memory_space<vmem>>, vector<8x8x512xf32>
    tpu.vector_store %arg8[%c0_7, %c0_8, %c0_9], %10 {strides = array<i32>} : memref<8x8x512xf32, #tpu.memory_space<vmem>>, vector<8x8x512xf32>,
    %c0_10 = arith.constant 0 : index
    %c0_11 = arith.constant 0 : index
    %12 = vector.load %arg4[%c0_10, %c0_11] : memref<128x512xf32, #tpu.memory_space<vmem>>, vector<128x512xf32>
    %c0_12 = arith.constant 0 : index
    %c0_13 = arith.constant 0 : index
    %13 = vector.load %arg6[%c0_12, %c0_13] : memref<8x128xf32, #tpu.memory_space<vmem>>, vector<8x128xf32>
    %c0_14 = arith.constant 0 : index
    %c0_15 = arith.constant 0 : index
    %14 = vector.load %arg7[%c0_14, %c0_15] : memref<8x128xf32, #tpu.memory_space<vmem>>, vector<8x128xf32>
    %c0_i32_16 = arith.constant 0 : i32
    %15 = arith.index_cast %c0_i32_16 : i32 to index
    %c0_17 = arith.constant 0 : index
    %c0_18 = arith.constant 0 : index
    %16 = vector.load %arg8[%15, %c0_17, %c0_18] : memref<8x8x512xf32, #tpu.memory_space<vmem>>, vector<1x8x512xf32>
    %17 = vector.shape_cast %16 : vector<1x8x512xf32> to vector<8x512xf32>
    %cst_19 = arith.constant dense<0.000000e+00> : vector<8x512xf32>
    %18 = tpu.matmul %13, %12, %cst_19 {dimension_numbers = #tpu.dot_dimension_numbers<[1], [0], [0], [1], [0, 0, 1, 1], [], []>} : vector<8x128xf32>, vector<128x512xf32>, vector<8x512xf32> -> vector<8x512xf32>
    %19 = arith.addf %17, %18 : vector<8x512xf32>
    %20 = vector.extract_strided_slice %19 {offsets = [0, 0], sizes = [8, 384], strides = [1, 1]} : vector<8x512xf32> to vector<8x384xf32>
    %21 = arith.negf %20 : vector<8x384xf32>
    %22 = math.exp %21 : vector<8x384xf32>
    %cst_20 = arith.constant 1.000000e+00 : f32
    %23 = vector.broadcast %cst_20 : f32 to vector<8x384xf32>
    %24 = arith.addf %23, %22 : vector<8x384xf32>
    %25 = arith.divf %23, %24 : vector<8x384xf32>
    %26 = vector.extract_strided_slice %25 {offsets = [0, 0], sizes = [8, 128], strides = [1, 1]} : vector<8x384xf32> to vector<8x128xf32>
    %27 = vector.extract_strided_slice %25 {offsets = [0, 128], sizes = [8, 128], strides = [1, 1]} : vector<8x384xf32> to vector<8x128xf32>
    %28 = vector.extract_strided_slice %25 {offsets = [0, 256], sizes = [8, 128], strides = [1, 1]} : vector<8x384xf32> to vector<8x128xf32>
    %29 = vector.extract_strided_slice %19 {offsets = [0, 384], sizes = [8, 128], strides = [1, 1]} : vector<8x512xf32> to vector<8x128xf32>
    %30 = math.tanh %29 : vector<8x128xf32>
    %31 = arith.mulf %27, %14 : vector<8x128xf32>
    %32 = arith.mulf %26, %30 : vector<8x128xf32>
    %33 = arith.addf %31, %32 : vector<8x128xf32>
    %34 = math.tanh %33 : vector<8x128xf32>
    %35 = arith.mulf %28, %34 : vector<8x128xf32>
    %c1_i32 = arith.constant 1 : i32
    %36 = arith.index_cast %c1_i32 : i32 to index
    %c0_21 = arith.constant 0 : index
    %c0_22 = arith.constant 0 : index
    %37 = vector.load %arg8[%36, %c0_21, %c0_22] : memref<8x8x512xf32, #tpu.memory_space<vmem>>, vector<1x8x512xf32>
    %38 = vector.shape_cast %37 : vector<1x8x512xf32> to vector<8x512xf32>
    %cst_23 = arith.constant dense<0.000000e+00> : vector<8x512xf32>
    %39 = tpu.matmul %35, %12, %cst_23 {dimension_numbers = #tpu.dot_dimension_numbers<[1], [0], [0], [1], [0, 0, 1, 1], [], []>} : vector<8x128xf32>, vector<128x512xf32>, vector<8x512xf32> -> vector<8x512xf32>
    %40 = arith.addf %38, %39 : vector<8x512xf32>
    %41 = vector.extract_strided_slice %40 {offsets = [0, 0], sizes = [8, 384], strides = [1, 1]} : vector<8x512xf32> to vector<8x384xf32>
    %42 = arith.negf %41 : vector<8x384xf32>
    %43 = math.exp %42 : vector<8x384xf32>
    %cst_24 = arith.constant 1.000000e+00 : f32
    %44 = vector.broadcast %cst_24 : f32 to vector<8x384xf32>
    %45 = arith.addf %44, %43 : vector<8x384xf32>
    %46 = arith.divf %44, %45 : vector<8x384xf32>
    %47 = vector.extract_strided_slice %46 {offsets = [0, 0], sizes = [8, 128], strides = [1, 1]} : vector<8x384xf32> to vector<8x128xf32>
    %48 = vector.extract_strided_slice %46 {offsets = [0, 128], sizes = [8, 128], strides = [1, 1]} : vector<8x384xf32> to vector<8x128xf32>
    %49 = vector.extract_strided_slice %46 {offsets = [0, 256], sizes = [8, 128], strides = [1, 1]} : vector<8x384xf32> to vector<8x128xf32>
    %50 = vector.extract_strided_slice %40 {offsets = [0, 384], sizes = [8, 128], strides = [1, 1]} : vector<8x512xf32> to vector<8x128xf32>
    %51 = math.tanh %50 : vector<8x128xf32>
    %52 = arith.mulf %48, %33 : vector<8x128xf32>
    %53 = arith.mulf %47, %51 : vector<8x128xf32>
    %54 = arith.addf %52, %53 : vector<8x128xf32>
    %55 = math.tanh %54 : vector<8x128xf32>
    %56 = arith.mulf %49, %55 : vector<8x128xf32>
    %c2_i32 = arith.constant 2 : i32
    %57 = arith.index_cast %c2_i32 : i32 to index
    %c0_25 = arith.constant 0 : index
    %c0_26 = arith.constant 0 : index
    %58 = vector.load %arg8[%57, %c0_25, %c0_26] : memref<8x8x512xf32, #tpu.memory_space<vmem>>, vector<1x8x512xf32>
    %59 = vector.shape_cast %58 : vector<1x8x512xf32> to vector<8x512xf32>
    %cst_27 = arith.constant dense<0.000000e+00> : vector<8x512xf32>
    %60 = tpu.matmul %56, %12, %cst_27 {dimension_numbers = #tpu.dot_dimension_numbers<[1], [0], [0], [1], [0, 0, 1, 1], [], []>} : vector<8x128xf32>, vector<128x512xf32>, vector<8x512xf32> -> vector<8x512xf32>
    %61 = arith.addf %59, %60 : vector<8x512xf32>
    %62 = vector.extract_strided_slice %61 {offsets = [0, 0], sizes = [8, 384], strides = [1, 1]} : vector<8x512xf32> to vector<8x384xf32>
    %63 = arith.negf %62 : vector<8x384xf32>
    %64 = math.exp %63 : vector<8x384xf32>
    %cst_28 = arith.constant 1.000000e+00 : f32
    %65 = vector.broadcast %cst_28 : f32 to vector<8x384xf32>
    %66 = arith.addf %65, %64 : vector<8x384xf32>
    %67 = arith.divf %65, %66 : vector<8x384xf32>
    %68 = vector.extract_strided_slice %67 {offsets = [0, 0], sizes = [8, 128], strides = [1, 1]} : vector<8x384xf32> to vector<8x128xf32>
    %69 = vector.extract_strided_slice %67 {offsets = [0, 128], sizes = [8, 128], strides = [1, 1]} : vector<8x384xf32> to vector<8x128xf32>
    %70 = vector.extract_strided_slice %67 {offsets = [0, 256], sizes = [8, 128], strides = [1, 1]} : vector<8x384xf32> to vector<8x128xf32>
    %71 = vector.extract_strided_slice %61 {offsets = [0, 384], sizes = [8, 128], strides = [1, 1]} : vector<8x512xf32> to vector<8x128xf32>
    %72 = math.tanh %71 : vector<8x128xf32>
    %73 = arith.mulf %69, %54 : vector<8x128xf32>
    %74 = arith.mulf %68, %72 : vector<8x128xf32>
    %75 = arith.addf %73, %74 : vector<8x128xf32>
    %76 = math.tanh %75 : vector<8x128xf32>
    %77 = arith.mulf %70, %76 : vector<8x128xf32>
    %c3_i32 = arith.constant 3 : i32
    %78 = arith.index_cast %c3_i32 : i32 to index
    %c0_29 = arith.constant 0 : index
    %c0_30 = arith.constant 0 : index
    %79 = vector.load %arg8[%78, %c0_29, %c0_30] : memref<8x8x512xf32, #tpu.memory_space<vmem>>, vector<1x8x512xf32>
    %80 = vector.shape_cast %79 : vector<1x8x512xf32> to vector<8x512xf32>
    %cst_31 = arith.constant dense<0.000000e+00> : vector<8x512xf32>
    %81 = tpu.matmul %77, %12, %cst_31 {dimension_numbers = #tpu.dot_dimension_numbers<[1], [0], [0], [1], [0, 0, 1, 1], [], []>} : vector<8x128xf32>, vector<128x512xf32>, vector<8x512xf32> -> vector<8x512xf32>
    %82 = arith.addf %80, %81 : vector<8x512xf32>
    %83 = vector.extract_strided_slice %82 {offsets = [0, 0], sizes = [8, 384], strides = [1, 1]} : vector<8x512xf32> to vector<8x384xf32>
    %84 = arith.negf %83 : vector<8x384xf32>
    %85 = math.exp %84 : vector<8x384xf32>
    %cst_32 = arith.constant 1.000000e+00 : f32
    %86 = vector.broadcast %cst_32 : f32 to vector<8x384xf32>
    %87 = arith.addf %86, %85 : vector<8x384xf32>
    %88 = arith.divf %86, %87 : vector<8x384xf32>
    %89 = vector.extract_strided_slice %88 {offsets = [0, 0], sizes = [8, 128], strides = [1, 1]} : vector<8x384xf32> to vector<8x128xf32>
    %90 = vector.extract_strided_slice %88 {offsets = [0, 128], sizes = [8, 128], strides = [1, 1]} : vector<8x384xf32> to vector<8x128xf32>
    %91 = vector.extract_strided_slice %88 {offsets = [0, 256], sizes = [8, 128], strides = [1, 1]} : vector<8x384xf32> to vector<8x128xf32>
    %92 = vector.extract_strided_slice %82 {offsets = [0, 384], sizes = [8, 128], strides = [1, 1]} : vector<8x512xf32> to vector<8x128xf32>
    %93 = math.tanh %92 : vector<8x128xf32>
    %94 = arith.mulf %90, %75 : vector<8x128xf32>
    %95 = arith.mulf %89, %93 : vector<8x128xf32>
    %96 = arith.addf %94, %95 : vector<8x128xf32>
    %97 = math.tanh %96 : vector<8x128xf32>
    %98 = arith.mulf %91, %97 : vector<8x128xf32>
    %c4_i32 = arith.constant 4 : i32
    %99 = arith.index_cast %c4_i32 : i32 to index
    %c0_33 = arith.constant 0 : index
    %c0_34 = arith.constant 0 : index
    %100 = vector.load %arg8[%99, %c0_33, %c0_34] : memref<8x8x512xf32, #tpu.memory_space<vmem>>, vector<1x8x512xf32>
    %101 = vector.shape_cast %100 : vector<1x8x512xf32> to vector<8x512xf32>
    %cst_35 = arith.constant dense<0.000000e+00> : vector<8x512xf32>
    %102 = tpu.matmul %98, %12, %cst_35 {dimension_numbers = #tpu.dot_dimension_numbers<[1], [0], [0], [1], [0, 0, 1, 1], [], []>} : vector<8x128xf32>, vector<128x512xf32>, vector<8x512xf32> -> vector<8x512xf32>
    %103 = arith.addf %101, %102 : vector<8x512xf32>
    %104 = vector.extract_strided_slice %103 {offsets = [0, 0], sizes = [8, 384], strides = [1, 1]} : vector<8x512xf32> to vector<8x384xf32>
    %105 = arith.negf %104 : vector<8x384xf32>
    %106 = math.exp %105 : vector<8x384xf32>
    %cst_36 = arith.constant 1.000000e+00 : f32
    %107 = vector.broadcast %cst_36 : f32 to vector<8x384xf32>
    %108 = arith.addf %107, %106 : vector<8x384xf32>
    %109 = arith.divf %107, %108 : vector<8x384xf32>
    %110 = vector.extract_strided_slice %109 {offsets = [0, 0], sizes = [8, 128], strides = [1, 1]} : vector<8x384xf32> to vector<8x128xf32>
    %111 = vector.extract_strided_slice %109 {offsets = [0, 128], sizes = [8, 128], strides = [1, 1]} : vector<8x384xf32> to vector<8x128xf32>
    %112 = vector.extract_strided_slice %109 {offsets = [0, 256], sizes = [8, 128], strides = [1, 1]} : vector<8x384xf32> to vector<8x128xf32>
    %113 = vector.extract_strided_slice %103 {offsets = [0, 384], sizes = [8, 128], strides = [1, 1]} : vector<8x512xf32> to vector<8x128xf32>
    %114 = math.tanh %113 : vector<8x128xf32>
    %115 = arith.mulf %111, %96 : vector<8x128xf32>
    %116 = arith.mulf %110, %114 : vector<8x128xf32>
    %117 = arith.addf %115, %116 : vector<8x128xf32>
    %118 = math.tanh %117 : vector<8x128xf32>
    %119 = arith.mulf %112, %118 : vector<8x128xf32>
    %c5_i32 = arith.constant 5 : i32
    %120 = arith.index_cast %c5_i32 : i32 to index
    %c0_37 = arith.constant 0 : index
    %c0_38 = arith.constant 0 : index
    %121 = vector.load %arg8[%120, %c0_37, %c0_38] : memref<8x8x512xf32, #tpu.memory_space<vmem>>, vector<1x8x512xf32>
    %122 = vector.shape_cast %121 : vector<1x8x512xf32> to vector<8x512xf32>
    %cst_39 = arith.constant dense<0.000000e+00> : vector<8x512xf32>
    %123 = tpu.matmul %119, %12, %cst_39 {dimension_numbers = #tpu.dot_dimension_numbers<[1], [0], [0], [1], [0, 0, 1, 1], [], []>} : vector<8x128xf32>, vector<128x512xf32>, vector<8x512xf32> -> vector<8x512xf32>
    %124 = arith.addf %122, %123 : vector<8x512xf32>
    %125 = vector.extract_strided_slice %124 {offsets = [0, 0], sizes = [8, 384], strides = [1, 1]} : vector<8x512xf32> to vector<8x384xf32>
    %126 = arith.negf %125 : vector<8x384xf32>
    %127 = math.exp %126 : vector<8x384xf32>
    %cst_40 = arith.constant 1.000000e+00 : f32
    %128 = vector.broadcast %cst_40 : f32 to vector<8x384xf32>
    %129 = arith.addf %128, %127 : vector<8x384xf32>
    %130 = arith.divf %128, %129 : vector<8x384xf32>
    %131 = vector.extract_strided_slice %130 {offsets = [0, 0], sizes = [8, 128], strides = [1, 1]} : vector<8x384xf32> to vector<8x128xf32>
    %132 = vector.extract_strided_slice %130 {offsets = [0, 128], sizes = [8, 128], strides = [1, 1]} : vector<8x384xf32> to vector<8x128xf32>
    %133 = vector.extract_strided_slice %130 {offsets = [0, 256], sizes = [8, 128], strides = [1, 1]} : vector<8x384xf32> to vector<8x128xf32>
    %134 = vector.extract_strided_slice %124 {offsets = [0, 384], sizes = [8, 128], strides = [1, 1]} : vector<8x512xf32> to vector<8x128xf32>
    %135 = math.tanh %134 : vector<8x128xf32>
    %136 = arith.mulf %132, %117 : vector<8x128xf32>
    %137 = arith.mulf %131, %135 : vector<8x128xf32>
    %138 = arith.addf %136, %137 : vector<8x128xf32>
    %139 = math.tanh %138 : vector<8x128xf32>
    %140 = arith.mulf %133, %139 : vector<8x128xf32>
    %c6_i32 = arith.constant 6 : i32
    %141 = arith.index_cast %c6_i32 : i32 to index
    %c0_41 = arith.constant 0 : index
    %c0_42 = arith.constant 0 : index
    %142 = vector.load %arg8[%141, %c0_41, %c0_42] : memref<8x8x512xf32, #tpu.memory_space<vmem>>, vector<1x8x512xf32>
    %143 = vector.shape_cast %142 : vector<1x8x512xf32> to vector<8x512xf32>
    %cst_43 = arith.constant dense<0.000000e+00> : vector<8x512xf32>
    %144 = tpu.matmul %140, %12, %cst_43 {dimension_numbers = #tpu.dot_dimension_numbers<[1], [0], [0], [1], [0, 0, 1, 1], [], []>} : vector<8x128xf32>, vector<128x512xf32>, vector<8x512xf32> -> vector<8x512xf32>
    %145 = arith.addf %143, %144 : vector<8x512xf32>
    %146 = vector.extract_strided_slice %145 {offsets = [0, 0], sizes = [8, 384], strides = [1, 1]} : vector<8x512xf32> to vector<8x384xf32>
    %147 = arith.negf %146 : vector<8x384xf32>
    %148 = math.exp %147 : vector<8x384xf32>
    %cst_44 = arith.constant 1.000000e+00 : f32
    %149 = vector.broadcast %cst_44 : f32 to vector<8x384xf32>
    %150 = arith.addf %149, %148 : vector<8x384xf32>
    %151 = arith.divf %149, %150 : vector<8x384xf32>
    %152 = vector.extract_strided_slice %151 {offsets = [0, 0], sizes = [8, 128], strides = [1, 1]} : vector<8x384xf32> to vector<8x128xf32>
    %153 = vector.extract_strided_slice %151 {offsets = [0, 128], sizes = [8, 128], strides = [1, 1]} : vector<8x384xf32> to vector<8x128xf32>
    %154 = vector.extract_strided_slice %151 {offsets = [0, 256], sizes = [8, 128], strides = [1, 1]} : vector<8x384xf32> to vector<8x128xf32>
    %155 = vector.extract_strided_slice %145 {offsets = [0, 384], sizes = [8, 128], strides = [1, 1]} : vector<8x512xf32> to vector<8x128xf32>
    %156 = math.tanh %155 : vector<8x128xf32>
    %157 = arith.mulf %153, %138 : vector<8x128xf32>
    %158 = arith.mulf %152, %156 : vector<8x128xf32>
    %159 = arith.addf %157, %158 : vector<8x128xf32>
    %160 = math.tanh %159 : vector<8x128xf32>
    %161 = arith.mulf %154, %160 : vector<8x128xf32>
    %c7_i32 = arith.constant 7 : i32
    %162 = arith.index_cast %c7_i32 : i32 to index
    %c0_45 = arith.constant 0 : index
    %c0_46 = arith.constant 0 : index
    %163 = vector.load %arg8[%162, %c0_45, %c0_46] : memref<8x8x512xf32, #tpu.memory_space<vmem>>, vector<1x8x512xf32>
    %164 = vector.shape_cast %163 : vector<1x8x512xf32> to vector<8x512xf32>
    %cst_47 = arith.constant dense<0.000000e+00> : vector<8x512xf32>
    %165 = tpu.matmul %161, %12, %cst_47 {dimension_numbers = #tpu.dot_dimension_numbers<[1], [0], [0], [1], [0, 0, 1, 1], [], []>} : vector<8x128xf32>, vector<128x512xf32>, vector<8x512xf32> -> vector<8x512xf32>
    %166 = arith.addf %164, %165 : vector<8x512xf32>
    %167 = vector.extract_strided_slice %166 {offsets = [0, 0], sizes = [8, 384], strides = [1, 1]} : vector<8x512xf32> to vector<8x384xf32>
    %168 = arith.negf %167 : vector<8x384xf32>
    %169 = math.exp %168 : vector<8x384xf32>
    %cst_48 = arith.constant 1.000000e+00 : f32
    %170 = vector.broadcast %cst_48 : f32 to vector<8x384xf32>
    %171 = arith.addf %170, %169 : vector<8x384xf32>
    %172 = arith.divf %170, %171 : vector<8x384xf32>
    %173 = vector.extract_strided_slice %172 {offsets = [0, 0], sizes = [8, 128], strides = [1, 1]} : vector<8x384xf32> to vector<8x128xf32>
    %174 = vector.extract_strided_slice %172 {offsets = [0, 128], sizes = [8, 128], strides = [1, 1]} : vector<8x384xf32> to vector<8x128xf32>
    %175 = vector.extract_strided_slice %172 {offsets = [0, 256], sizes = [8, 128], strides = [1, 1]} : vector<8x384xf32> to vector<8x128xf32>
    %176 = vector.extract_strided_slice %166 {offsets = [0, 384], sizes = [8, 128], strides = [1, 1]} : vector<8x512xf32> to vector<8x128xf32>
    %177 = math.tanh %176 : vector<8x128xf32>
    %178 = arith.mulf %174, %159 : vector<8x128xf32>
    %179 = arith.mulf %173, %177 : vector<8x128xf32>
    %180 = arith.addf %178, %179 : vector<8x128xf32>
    %181 = math.tanh %180 : vector<8x128xf32>
    %182 = arith.mulf %175, %181 : vector<8x128xf32>
    %c8_i32 = arith.constant 8 : i32
    %c0_49 = arith.constant 0 : index
    %c0_50 = arith.constant 0 : index
    %183 = vector.load %arg6[%c0_49, %c0_50] : memref<8x128xf32, #tpu.memory_space<vmem>>, vector<8x128xf32>
    tpu.vector_store %arg6[%c0_49, %c0_50], %182 {strides = array<i32>} : memref<8x128xf32, #tpu.memory_space<vmem>>, vector<8x128xf32>,
    %c0_51 = arith.constant 0 : index
    %c0_52 = arith.constant 0 : index
    %184 = vector.load %arg7[%c0_51, %c0_52] : memref<8x128xf32, #tpu.memory_space<vmem>>, vector<8x128xf32>
    tpu.vector_store %arg7[%c0_51, %c0_52], %180 {strides = array<i32>} : memref<8x128xf32, #tpu.memory_space<vmem>>, vector<8x128xf32>,
    return
  }
  func.func @transform_0(%arg0: i32, %arg1: i32) -> (i32, i32, i32) {
    %c0_i32 = arith.constant 0 : i32
    %c0_i32_0 = arith.constant 0 : i32
    return %arg1, %arg0, %c0_i32 : i32, i32, i32
  }
  func.func @transform_1(%arg0: i32, %arg1: i32) -> (i32, i32) {
    %c0_i32 = arith.constant 0 : i32
    %c0_i32_0 = arith.constant 0 : i32
    %c0_i32_1 = arith.constant 0 : i32
    return %c0_i32, %c0_i32_0 : i32, i32
  }
  func.func @transform_2(%arg0: i32, %arg1: i32) -> (i32, i32) {
    %c0_i32 = arith.constant 0 : i32
    %c0_i32_0 = arith.constant 0 : i32
    %c0_i32_1 = arith.constant 0 : i32
    return %c0_i32, %c0_i32_0 : i32, i32
  }
  func.func @transform_3(%arg0: i32, %arg1: i32) -> (i32, i32) {
    %c0_i32 = arith.constant 0 : i32
    %c0_i32_0 = arith.constant 0 : i32
    %c0_i32_1 = arith.constant 0 : i32
    return %c0_i32, %c0_i32_0 : i32, i32
  }
  func.func @transform_4(%arg0: i32, %arg1: i32) -> (i32, i32) {
    %c0_i32 = arith.constant 0 : i32
    %c0_i32_0 = arith.constant 0 : i32
    return %arg0, %c0_i32 : i32, i32
  }
  func.func @transform_5(%arg0: i32, %arg1: i32) -> (i32, i32) {
    %c0_i32 = arith.constant 0 : i32
    %c0_i32_0 = arith.constant 0 : i32
    return %arg0, %c0_i32 : i32, i32
  }
}

</mosaic_0001>

<bundles_post_ra>
// kernel: lstm_forward.1
= control target key start
LH: loop header
LB: loop body
LE: loop exit
PB: predicated region body
PF: predicated region fallthrough
CT: control target
= control target key end

     0   :  { %11 = vsyncpa [#allocation4], 0  ;;  %s1858_s21 = smov [#allocation3]   ;;  %s1859_s23 = smov 512   ;;  %s2890_s0 = inlined_call_operand.vmem [shape: f32[8,8,16], index: 0, kind: input, shape index: {}]   ;;  %s2891_s1 = inlined_call_operand.vmem [shape: f32[16,512], index: 1, kind: input, shape index: {}]   ;;  %s2892_s2 = inlined_call_operand.hbm [shape: f32[128,512], index: 2, kind: input, shape index: {}]   ;;  %s2893_s3 = inlined_call_operand.vmem [shape: f32[1,512], index: 3, kind: input, shape index: {}]   ;;  %s2894_s4 = inlined_call_operand.vmem [shape: f32[8,128], index: 4, kind: output, shape index: {0}]   ;;  %s2895_s5 = inlined_call_operand.vmem [shape: f32[8,128], index: 5, kind: output, shape index: {1}]  }
   0x1   :  { %s20_s20 = sshll.u32 %s2892_s2, 4  ;;  %s22_s22 = sshll.u32 %s1858_s21, 4  ;;  %s21_s20 = int_to_ptr.hbm [resolvable:$true] %s20_s20  ;;  %s23_s22 = int_to_ptr.vmem [resolvable:$true] %s22_s22 }
   0x2   :  { %s1860_s24 = smov 32  }
   0x3   :  { %28 = dma.hbm_to_vmem [thread:$0]  %s21_s20, 8192, %s23_s22, [#allocation4], %s1859_s23, %s1859_s23, %s1860_s24  }
   0x4   :  { %1856 = dma.done.wait [#allocation4], 8192  }
   0x5   :  { %1857 = vsyncadd [#allocation4], 4294959104  ;;  %v53_v0 = vld [vmem:[%s2891_s1 + $0x20] sm:$0xff]  ;;  %v54_v1 = vld [vmem:[%s2891_s1 + $0x28] sm:$0xff]  ;;  %vm67_vm0 = vcmask 130048  }
   0x6   :  { %v55_v2 = vld [vmem:[%s2891_s1 + $0x30] sm:$0xff]  ;;  %106 = vmatpush.msra.mxu0 %v53_v0  ;;  %147 = vmatpush.msra.mxu1 %v54_v1  ;;  %v56_v3 = vld [vmem:[%s2891_s1 + $0x38] sm:$0xff]  ;;  %v49_v4 = vld [vmem:[%s2891_s1] sm:$0xff] }
   0x7   :  { %v50_v5 = vld [vmem:[%s2891_s1 + $0x8] sm:$0xff]  ;;  %188 = vmatpush.msra.mxu2 %v55_v2  ;;  %229 = vmatpush.msra.mxu3 %v56_v3  ;;  %v51_v6 = vld [vmem:[%s2891_s1 + $0x10] sm:$0xff]  ;;  %v52_v7 = vld [vmem:[%s2891_s1 + $0x18] sm:$0xff] }
   0x8   :  { %v41_v8 = vld [vmem:[%s2890_s0] sm:$0xff]  ;;  %107 = vmatpush.msra.mxu0 %v49_v4  ;;  %148 = vmatpush.msra.mxu1 %v50_v5  ;;  %v1924_v10 = vld [vmem:[#allocation3 + $0x1e8] sm:$0xff]  ;;  %v1928_v11 = vld [vmem:[#allocation3 + $0x1f0] sm:$0xff] }
   0x9   :  { %189 = vmatpush.msra.mxu2 %v51_v6  ;;  %230 = vmatpush.msra.mxu3 %v52_v7  ;;  %v1922_v9 = vld [vmem:[#allocation3 + $0x1e0] sm:$0xff]  ;;  %v1934_v13 = vld [vmem:[#allocation3 + $0x1c8] sm:$0xff]  ;;  %v1938_v14 = vld [vmem:[#allocation3 + $0x1d0] sm:$0xff] }
   0xa   :  { %1580 = vmatmul.msk.f32.vlgmr.msra.gmra.mxu0 %vm67_vm0, %v41_v8  ;;  %1588 = vmatmul.msk.f32.vlgmr.msra.gmra.mxu1 %vm67_vm0, %v41_v8  ;;  %v1932_v12 = vld [vmem:[#allocation3 + $0x1c0] sm:$0xff]  ;;  %v1940_v15 = vld [vmem:[#allocation3 + $0x1f8] sm:$0xff]  ;;  %v1945_v17 = vld [vmem:[#allocation3 + $0x1a8] sm:$0xff] }
   0xb   :  { %1596 = vmatmul.msk.f32.vlgmr.msra.gmra.mxu2 %vm67_vm0, %v41_v8  ;;  %1604 = vmatmul.msk.f32.vlgmr.msra.gmra.mxu3 %vm67_vm0, %v41_v8  ;;  %v1943_v16 = vld [vmem:[#allocation3 + $0x1a0] sm:$0xff]  ;;  %v1948_v18 = vld [vmem:[#allocation3 + $0x1d8] sm:$0xff]  ;;  %v1952_v19 = vld [vmem:[#allocation3 + $0x1b0] sm:$0xff] }
   0xc   :  { %358 = vmatpush.msrb.mxu0 %v1922_v9  ;;  %378 = vmatpush.msrb.mxu1 %v1924_v10  ;;  %v42_v20 = vld [vmem:[%s2890_s0 + $0x8] sm:$0xff]  ;;  %v1959_v21 = vld [vmem:[#allocation3 + $0x1b8] sm:$0xff]  ;;  %v1963_v22 = vld [vmem:[#allocation3 + $0x180] sm:$0xff] }
   0xd   :  { %398 = vmatpush.msrb.mxu2 %v1928_v11  ;;  %418 = vmatpush.msrb.mxu3 %v1940_v15  ;;  %v1965_v23 = vld [vmem:[#allocation3 + $0x188] sm:$0xff]  ;;  %v1971_v24 = vld [vmem:[#allocation3 + $0x190] sm:$0xff]  ;;  %v1973_v25 = vld [vmem:[#allocation3 + $0x198] sm:$0xff] }
   0xe   :  { %359 = vmatpush.msrb.mxu0 %v1932_v12  ;;  %379 = vmatpush.msrb.mxu1 %v1934_v13  ;;  %v1977_v26 = vld [vmem:[#allocation3 + $0x160] sm:$0xff]  ;;  %v1979_v27 = vld [vmem:[#allocation3 + $0x168] sm:$0xff]  ;;  %v1983_v28 = vld [vmem:[#allocation3 + $0x170] sm:$0xff] }
   0xf   :  { %399 = vmatpush.msrb.mxu2 %v1938_v14  ;;  %419 = vmatpush.msrb.mxu3 %v1948_v18  ;;  %v1985_v29 = vld [vmem:[#allocation3 + $0x178] sm:$0xff]  ;;  %v1988_v30 = vld [vmem:[#allocation3 + $0x140] sm:$0xff]  ;;  %v1990_v31 = vld [vmem:[#allocation3 + $0x148] sm:$0xff] }
  0x10   :  { %360 = vmatpush.msrb.mxu0 %v1943_v16  ;;  %380 = vmatpush.msrb.mxu1 %v1945_v17  ;;  %v1995_v32 = vld [vmem:[#allocation3 + $0x150] sm:$0xff]  ;;  %v1997_v33 = vld [vmem:[#allocation3 + $0x158] sm:$0xff]  ;;  %v2006_v35 = vld [vmem:[#allocation3 + $0x120] sm:$0xff] }
  0x11   :  { %400 = vmatpush.msrb.mxu2 %v1952_v19  ;;  %420 = vmatpush.msrb.mxu3 %v1959_v21  ;;  %v43_v34 = vld [vmem:[%s2890_s0 + $0x10] sm:$0xff]  ;;  %v2008_v36 = vld [vmem:[#allocation3 + $0x128] sm:$0xff]  ;;  %v2016_v38 = vld [vmem:[#allocation3 + $0x138] sm:$0xff] }
  0x12   :  { %1581 = vmatmul.msk.f32.gmra.mxu0 %vm67_vm0, %v42_v20  ;;  %1589 = vmatmul.msk.f32.gmra.mxu1 %vm67_vm0, %v42_v20  ;;  %v2014_v37 = vld [vmem:[#allocation3 + $0x130] sm:$0xff]  ;;  %v2020_v39 = vld [vmem:[#allocation3 + $0x100] sm:$0xff]  ;;  %v2022_v40 = vld [vmem:[#allocation3 + $0x108] sm:$0xff] }
  0x13   :  { %1597 = vmatmul.msk.f32.gmra.mxu2 %vm67_vm0, %v42_v20  ;;  %1605 = vmatmul.msk.f32.gmra.mxu3 %vm67_vm0, %v42_v20  ;;  %v2026_v41 = vld [vmem:[#allocation3 + $0x110] sm:$0xff]  ;;  %v2028_v42 = vld [vmem:[#allocation3 + $0x118] sm:$0xff]  ;;  %v2031_v43 = vld [vmem:[#allocation3 + $0xe0] sm:$0xff] }
  0x14   :  { %361 = vmatpush.msrb.mxu0 %v1963_v22  ;;  %381 = vmatpush.msrb.mxu1 %v1965_v23  ;;  %v2033_v44 = vld [vmem:[#allocation3 + $0xe8] sm:$0xff]  ;;  %v2038_v45 = vld [vmem:[#allocation3 + $0xf0] sm:$0xff]  ;;  %v2040_v46 = vld [vmem:[#allocation3 + $0xf8] sm:$0xff] }
  0x15   :  { %401 = vmatpush.msrb.mxu2 %v1971_v24  ;;  %421 = vmatpush.msrb.mxu3 %v1973_v25  ;;  %v44_v47 = vld [vmem:[%s2890_s0 + $0x18] sm:$0xff]  ;;  %v2049_v48 = vld [vmem:[#allocation3 + $0xc0] sm:$0xff]  ;;  %v2051_v49 = vld [vmem:[#allocation3 + $0xc8] sm:$0xff] }
  0x16   :  { %362 = vmatpush.msrb.mxu0 %v1977_v26  ;;  %382 = vmatpush.msrb.mxu1 %v1979_v27  ;;  %v2057_v50 = vld [vmem:[#allocation3 + $0xd0] sm:$0xff]  ;;  %v2059_v51 = vld [vmem:[#allocation3 + $0xd8] sm:$0xff]  ;;  %v2063_v52 = vld [vmem:[#allocation3 + $0xa0] sm:$0xff] }
  0x17   :  { %402 = vmatpush.msrb.mxu2 %v1983_v28  ;;  %422 = vmatpush.msrb.mxu3 %v1985_v29  ;;  %2983 = vst [vmem:[#allocation6_spill] sm:$0xff] %v2057_v50  ;;  %v2065_v53 = vld [vmem:[#allocation3 + $0xa8] sm:$0xff]  ;;  %v2069_v54 = vld [vmem:[#allocation3 + $0xb0] sm:$0xff]  ;;  %v2071_v55 = vld [vmem:[#allocation3 + $0xb8] sm:$0xff] }
  0x18   :  { %363 = vmatpush.msrb.mxu0 %v1988_v30  ;;  %383 = vmatpush.msrb.mxu1 %v1990_v31  ;;  %2984 = vst [vmem:[#allocation7_spill] sm:$0xff] %v2059_v51  ;;  %v2074_v56 = vld [vmem:[#allocation3 + $0x80] sm:$0xff]  ;;  %v2076_v57 = vld [vmem:[#allocation3 + $0x88] sm:$0xff]  ;;  %v2081_v58 = vld [vmem:[#allocation3 + $0x90] sm:$0xff] }
  0x19   :  { %403 = vmatpush.msrb.mxu2 %v1995_v32  ;;  %423 = vmatpush.msrb.mxu3 %v1997_v33  ;;  %2985 = vst [vmem:[#allocation8_spill] sm:$0xff] %v2063_v52  ;;  %v2083_v59 = vld [vmem:[#allocation3 + $0x98] sm:$0xff]  ;;  %v45_v60 = vld [vmem:[%s2890_s0 + $0x20] sm:$0xff]  ;;  %v2094_v62 = vld [vmem:[#allocation3 + $0x68] sm:$0xff] }
  0x1a   :  { %1582 = vmatmul.msk.f32.gmra.mxu0 %vm67_vm0, %v43_v34  ;;  %1590 = vmatmul.msk.f32.gmra.mxu1 %vm67_vm0, %v43_v34  ;;  %2986 = vst [vmem:[#allocation9_spill] sm:$0xff] %v2065_v53  ;;  %v2092_v61 = vld [vmem:[#allocation3 + $0x60] sm:$0xff]  ;;  %v2100_v63 = vld [vmem:[#allocation3 + $0x70] sm:$0xff]  ;;  %v2102_v0 = vld [vmem:[#allocation3 + $0x78] sm:$0xff] }
  0x1b   :  { %1598 = vmatmul.msk.f32.gmra.mxu2 %vm67_vm0, %v43_v34  ;;  %1606 = vmatmul.msk.f32.gmra.mxu3 %vm67_vm0, %v43_v34  ;;  %2987 = vst [vmem:[#allocation10_spill] sm:$0xff] %v2069_v54  ;;  %v2106_v1 = vld [vmem:[#allocation3 + $0x40] sm:$0xff]  ;;  %v2108_v2 = vld [vmem:[#allocation3 + $0x48] sm:$0xff]  ;;  %v2112_v3 = vld [vmem:[#allocation3 + $0x50] sm:$0xff] }
  0x1c   :  { %364 = vmatpush.msrb.mxu0 %v2006_v35  ;;  %384 = vmatpush.msrb.mxu1 %v2008_v36  ;;  %2988 = vst [vmem:[#allocation11_spill] sm:$0xff] %v2071_v55  ;;  %v2114_v4 = vld [vmem:[#allocation3 + $0x58] sm:$0xff]  ;;  %v2117_v5 = vld [vmem:[#allocation3 + $0x20] sm:$0xff]  ;;  %v2119_v6 = vld [vmem:[#allocation3 + $0x28] sm:$0xff] }
  0x1d   :  { %404 = vmatpush.msrb.mxu2 %v2014_v37  ;;  %424 = vmatpush.msrb.mxu3 %v2016_v38  ;;  %2989 = vst [vmem:[#allocation12_spill] sm:$0xff] %v2074_v56  ;;  %v2124_v7 = vld [vmem:[#allocation3 + $0x30] sm:$0xff]  ;;  %v2126_v8 = vld [vmem:[#allocation3 + $0x38] sm:$0xff]  ;;  %v46_v20 = vld [vmem:[%s2890_s0 + $0x28] sm:$0xff] }
  0x1e   :  { %365 = vmatpush.msrb.mxu0 %v2020_v39  ;;  %385 = vmatpush.msrb.mxu1 %v2022_v40  ;;  %2990 = vst [vmem:[#allocation13_spill] sm:$0xff] %v2076_v57  ;;  %v2135_v34 = vld [vmem:[#allocation3] sm:$0xff] }
  0x1f   :  { %405 = vmatpush.msrb.mxu2 %v2026_v41  ;;  %425 = vmatpush.msrb.mxu3 %v2028_v42  ;;  %2991 = vst [vmem:[#allocation14_spill] sm:$0xff] %v2081_v58 }
  0x20   :  { %366 = vmatpush.msrb.mxu0 %v2031_v43  ;;  %386 = vmatpush.msrb.mxu1 %v2033_v44  ;;  %2992 = vst [vmem:[#allocation15_spill] sm:$0xff] %v2083_v59 }
  0x21   :  { %406 = vmatpush.msrb.mxu2 %v2038_v45  ;;  %426 = vmatpush.msrb.mxu3 %v2040_v46  ;;  %2993 = vst [vmem:[#allocation16_spill] sm:$0xff] %v2092_v61 }
  0x22   :  { %1583 = vmatmul.msk.f32.gmra.mxu0 %vm67_vm0, %v44_v47  ;;  %1591 = vmatmul.msk.f32.gmra.mxu1 %vm67_vm0, %v44_v47  ;;  %2994 = vst [vmem:[#allocation17_spill] sm:$0xff] %v2094_v62 }
  0x23   :  { %1599 = vmatmul.msk.f32.gmra.mxu2 %vm67_vm0, %v44_v47  ;;  %1607 = vmatmul.msk.f32.gmra.mxu3 %vm67_vm0, %v44_v47  ;;  %2995 = vst [vmem:[#allocation18_spill] sm:$0xff] %v2100_v63  ;;  %v2137_v47 = vld [vmem:[#allocation3 + $0x8] sm:$0xff] }
  0x24   :  { %367 = vmatpush.msrb.mxu0 %v2049_v48  ;;  %387 = vmatpush.msrb.mxu1 %v2051_v49  ;;  %2996 = vst [vmem:[#allocation19_spill] sm:$0xff] %v2102_v0 }
  0x25   :  { %407 = vmatpush.msrb.mxu2 %v2057_v50  ;;  %427 = vmatpush.msrb.mxu3 %v2059_v51  ;;  %2997 = vst [vmem:[#allocation20_spill] sm:$0xff] %v2106_v1 }
  0x26   :  { %368 = vmatpush.msrb.mxu0 %v2063_v52  ;;  %388 = vmatpush.msrb.mxu1 %v2065_v53  ;;  %2998 = vst [vmem:[#allocation21_spill] sm:$0xff] %v2108_v2 }
  0x27   :  { %408 = vmatpush.msrb.mxu2 %v2069_v54  ;;  %428 = vmatpush.msrb.mxu3 %v2071_v55  ;;  %2999 = vst [vmem:[#allocation22_spill] sm:$0xff] %v2112_v3 }
  0x28   :  { %369 = vmatpush.msrb.mxu0 %v2074_v56  ;;  %389 = vmatpush.msrb.mxu1 %v2076_v57  ;;  %3000 = vst [vmem:[#allocation23_spill] sm:$0xff] %v2114_v4 }
  0x29   :  { %409 = vmatpush.msrb.mxu2 %v2081_v58  ;;  %429 = vmatpush.msrb.mxu3 %v2083_v59  ;;  %3001 = vst [vmem:[#allocation24_spill] sm:$0xff] %v2117_v5 }
  0x2a   :  { %1584 = vmatmul.msk.f32.gmra.mxu0 %vm67_vm0, %v45_v60  ;;  %1592 = vmatmul.msk.f32.gmra.mxu1 %vm67_vm0, %v45_v60  ;;  %3002 = vst [vmem:[#allocation25_spill] sm:$0xff] %v2119_v6 }
  0x2b   :  { %1600 = vmatmul.msk.f32.gmra.mxu2 %vm67_vm0, %v45_v60  ;;  %1608 = vmatmul.msk.f32.gmra.mxu3 %vm67_vm0, %v45_v60  ;;  %3003 = vst [vmem:[#allocation26_spill] sm:$0xff] %v2124_v7  ;;  %v2143_v60 = vld [vmem:[#allocation3 + $0x10] sm:$0xff] }
  0x2c   :  { %370 = vmatpush.msrb.mxu0 %v2092_v61  ;;  %390 = vmatpush.msrb.mxu1 %v2094_v62  ;;  %3004 = vst [vmem:[#allocation27_spill] sm:$0xff] %v2126_v8 }
  0x2d   :  { %410 = vmatpush.msrb.mxu2 %v2100_v63  ;;  %430 = vmatpush.msrb.mxu3 %v2102_v0  ;;  %3005 = vst [vmem:[#allocation28_spill] sm:$0xff] %v2135_v34 }
  0x2e   :  { %371 = vmatpush.msrb.mxu0 %v2106_v1  ;;  %391 = vmatpush.msrb.mxu1 %v2108_v2  ;;  %3006 = vst [vmem:[#allocation29_spill] sm:$0xff] %v2137_v47 }
  0x2f   :  { %411 = vmatpush.msrb.mxu2 %v2112_v3  ;;  %431 = vmatpush.msrb.mxu3 %v2114_v4  ;;  %3007 = vst [vmem:[#allocation30_spill] sm:$0xff] %v2143_v60  ;;  %v2145_v3 = vld [vmem:[#allocation3 + $0x18] sm:$0xff] }
  0x30   :  { %372 = vmatpush.msrb.mxu0 %v2117_v5  ;;  %392 = vmatpush.msrb.mxu1 %v2119_v6  ;;  %3008 = vst [vmem:[#allocation31_spill] sm:$0xff] %v2145_v3 }
  0x31   :  { %412 = vmatpush.msrb.mxu2 %v2124_v7  ;;  %432 = vmatpush.msrb.mxu3 %v2126_v8  ;;  %v47_v8 = vld [vmem:[%s2890_s0 + $0x30] sm:$0xff] }
  0x32   :  { %1585 = vmatmul.msk.f32.gmra.mxu0 %vm67_vm0, %v46_v20  ;;  %1593 = vmatmul.msk.f32.gmra.mxu1 %vm67_vm0, %v46_v20 }
  0x33   :  { %1601 = vmatmul.msk.f32.gmra.mxu2 %vm67_vm0, %v46_v20  ;;  %1609 = vmatmul.msk.f32.gmra.mxu3 %vm67_vm0, %v46_v20  ;;  %v48_v20 = vld [vmem:[%s2890_s0 + $0x38] sm:$0xff] }
  0x34   :  { %373 = vmatpush.msrb.mxu0 %v2135_v34  ;;  %393 = vmatpush.msrb.mxu1 %v2137_v47 }
  0x35   :  { %413 = vmatpush.msrb.mxu2 %v2143_v60  ;;  %433 = vmatpush.msrb.mxu3 %v2145_v3 }
  0x36   :  { %510 = vmatpush.msra.mxu0 %v1922_v9  ;;  %530 = vmatpush.msra.mxu1 %v1924_v10 }
  0x37   :  { %550 = vmatpush.msra.mxu2 %v1928_v11  ;;  %570 = vmatpush.msra.mxu3 %v1940_v15 }
  0x38   :  { %511 = vmatpush.msra.mxu0 %v1932_v12  ;;  %531 = vmatpush.msra.mxu1 %v1934_v13 }
  0x39   :  { %551 = vmatpush.msra.mxu2 %v1938_v14  ;;  %571 = vmatpush.msra.mxu3 %v1948_v18 }
  0x3a   :  { %1586 = vmatmul.msk.f32.gmra.mxu0 %vm67_vm0, %v47_v8  ;;  %1594 = vmatmul.msk.f32.gmra.mxu1 %vm67_vm0, %v47_v8 }
  0x3b   :  { %1602 = vmatmul.msk.f32.gmra.mxu2 %vm67_vm0, %v47_v8  ;;  %1610 = vmatmul.msk.f32.gmra.mxu3 %vm67_vm0, %v47_v8  ;;  %v1861_v8 = vmov 0.0  }
  0x3c   :  { %512 = vmatpush.msra.mxu0 %v1943_v16  ;;  %532 = vmatpush.msra.mxu1 %v1945_v17 }
  0x3d   :  { %552 = vmatpush.msra.mxu2 %v1952_v19  ;;  %572 = vmatpush.msra.mxu3 %v1959_v21 }
  0x3e   :  { %513 = vmatpush.msra.mxu0 %v1963_v22  ;;  %533 = vmatpush.msra.mxu1 %v1965_v23 }
  0x3f   :  { %553 = vmatpush.msra.mxu2 %v1971_v24  ;;  %573 = vmatpush.msra.mxu3 %v1973_v25 }
  0x40   :  { %514 = vmatpush.msra.mxu0 %v1977_v26  ;;  %534 = vmatpush.msra.mxu1 %v1979_v27 }
  0x41   :  { %554 = vmatpush.msra.mxu2 %v1983_v28  ;;  %574 = vmatpush.msra.mxu3 %v1985_v29 }
  0x42   :  { %1587 = vmatmul.msk.f32.gmra.mxu0 %vm67_vm0, %v48_v20  ;;  %1595 = vmatmul.msk.f32.gmra.mxu1 %vm67_vm0, %v48_v20 }
  0x43   :  { %1603 = vmatmul.msk.f32.gmra.mxu2 %vm67_vm0, %v48_v20  ;;  %1611 = vmatmul.msk.f32.gmra.mxu3 %vm67_vm0, %v48_v20  ;;  %v3009_v20 = vld [vmem:[#allocation22_spill] sm:$0xff] }
  0x44   :  { %515 = vmatpush.msra.mxu0 %v1988_v30  ;;  %535 = vmatpush.msra.mxu1 %v1990_v31 }
  0x45   :  { %555 = vmatpush.msra.mxu2 %v1995_v32  ;;  %575 = vmatpush.msra.mxu3 %v1997_v33 }
  0x46   :  { %516 = vmatpush.msra.mxu0 %v2006_v35  ;;  %536 = vmatpush.msra.mxu1 %v2008_v36 }
  0x47   :  { %556 = vmatpush.msra.mxu2 %v2014_v37  ;;  %576 = vmatpush.msra.mxu3 %v2016_v38 }
  0x48   :  { %517 = vmatpush.msra.mxu0 %v2020_v39  ;;  %537 = vmatpush.msra.mxu1 %v2022_v40 }
  0x49   :  { %557 = vmatpush.msra.mxu2 %v2026_v41  ;;  %577 = vmatpush.msra.mxu3 %v2028_v42 }
  0x4a   :  { %374 = vmatmul.f32.vlgmr.msrb.gmra.mxu0 %v1861_v8  ;;  %394 = vmatmul.f32.vlgmr.msrb.gmra.mxu1 %v1861_v8 }
  0x4b   :  { %414 = vmatmul.f32.vlgmr.msrb.gmra.mxu2 %v1861_v8  ;;  %434 = vmatmul.f32.vlgmr.msrb.gmra.mxu3 %v1861_v8  ;;  %v3010_v8 = vld [vmem:[#allocation27_spill] sm:$0xff] }
  0x4c   :  { %518 = vmatpush.msra.mxu0 %v2031_v43  ;;  %538 = vmatpush.msra.mxu1 %v2033_v44 }
  0x4d   :  { %558 = vmatpush.msra.mxu2 %v2038_v45  ;;  %578 = vmatpush.msra.mxu3 %v2040_v46 }
  0x4e   :  { %519 = vmatpush.msra.mxu0 %v2049_v48  ;;  %539 = vmatpush.msra.mxu1 %v2051_v49 }
  0x4f   :  { %559 = vmatpush.msra.mxu2 %v2057_v50  ;;  %579 = vmatpush.msra.mxu3 %v2059_v51 }
  0x50   :  { %520 = vmatpush.msra.mxu0 %v2063_v52  ;;  %540 = vmatpush.msra.mxu1 %v2065_v53 }
  0x51   :  { %560 = vmatpush.msra.mxu2 %v2069_v54  ;;  %580 = vmatpush.msra.mxu3 %v2071_v55 }
  0x52   :  { %521 = vmatpush.msra.mxu0 %v2074_v56  ;;  %541 = vmatpush.msra.mxu1 %v2076_v57 }
  0x53   :  { %561 = vmatpush.msra.mxu2 %v2081_v58  ;;  %581 = vmatpush.msra.mxu3 %v2083_v59 }
  0x54   :  { %522 = vmatpush.msra.mxu0 %v2092_v61  ;;  %542 = vmatpush.msra.mxu1 %v2094_v62 }
  0x55   :  { %562 = vmatpush.msra.mxu2 %v2100_v63  ;;  %582 = vmatpush.msra.mxu3 %v2102_v0 }
  0x56   :  { %523 = vmatpush.msra.mxu0 %v2106_v1  ;;  %543 = vmatpush.msra.mxu1 %v2108_v2 }
  0x57   :  { %563 = vmatpush.msra.mxu2 %v3009_v20  ;;  %583 = vmatpush.msra.mxu3 %v2114_v4 }
  0x58   :  { %524 = vmatpush.msra.mxu0 %v2117_v5  ;;  %544 = vmatpush.msra.mxu1 %v2119_v6 }
  0x59   :  { %564 = vmatpush.msra.mxu2 %v2124_v7  ;;  %584 = vmatpush.msra.mxu3 %v3010_v8 }
  0x5a   :  { %525 = vmatpush.msra.mxu0 %v2135_v34  ;;  %545 = vmatpush.msra.mxu1 %v2137_v47 }
  0x5b   :  { %565 = vmatpush.msra.mxu2 %v2143_v60  ;;  %585 = vmatpush.msra.mxu3 %v2145_v3 }
  0x5c   :  { %662 = vmatpush.msrb.mxu0 %v1922_v9  ;;  %682 = vmatpush.msrb.mxu1 %v1924_v10 }
  0x5d   :  { %702 = vmatpush.msrb.mxu2 %v1928_v11  ;;  %722 = vmatpush.msrb.mxu3 %v1940_v15 }
  0x5e   :  { %663 = vmatpush.msrb.mxu0 %v1932_v12  ;;  %683 = vmatpush.msrb.mxu1 %v1934_v13 }
  0x5f   :  { %703 = vmatpush.msrb.mxu2 %v1938_v14  ;;  %723 = vmatpush.msrb.mxu3 %v1948_v18 }
  0x60   :  { %664 = vmatpush.msrb.mxu0 %v1943_v16  ;;  %684 = vmatpush.msrb.mxu1 %v1945_v17 }
  0x61   :  { %704 = vmatpush.msrb.mxu2 %v1952_v19  ;;  %724 = vmatpush.msrb.mxu3 %v1959_v21 }
  0x62   :  { %665 = vmatpush.msrb.mxu0 %v1963_v22  ;;  %685 = vmatpush.msrb.mxu1 %v1965_v23 }
  0x63   :  { %705 = vmatpush.msrb.mxu2 %v1971_v24  ;;  %725 = vmatpush.msrb.mxu3 %v1973_v25 }
  0x64   :  { %666 = vmatpush.msrb.mxu0 %v1977_v26  ;;  %686 = vmatpush.msrb.mxu1 %v1979_v27 }
  0x65   :  { %706 = vmatpush.msrb.mxu2 %v1983_v28  ;;  %726 = vmatpush.msrb.mxu3 %v1985_v29 }
  0x66   :  { %667 = vmatpush.msrb.mxu0 %v1988_v30  ;;  %687 = vmatpush.msrb.mxu1 %v1990_v31 }
  0x67   :  { %707 = vmatpush.msrb.mxu2 %v1995_v32  ;;  %727 = vmatpush.msrb.mxu3 %v1997_v33 }
  0x68   :  { %668 = vmatpush.msrb.mxu0 %v2006_v35  ;;  %688 = vmatpush.msrb.mxu1 %v2008_v36 }
  0x69   :  { %708 = vmatpush.msrb.mxu2 %v2014_v37  ;;  %728 = vmatpush.msrb.mxu3 %v2016_v38 }
  0x6a   :  { %669 = vmatpush.msrb.mxu0 %v2020_v39  ;;  %689 = vmatpush.msrb.mxu1 %v2022_v40 }
  0x6b   :  { %709 = vmatpush.msrb.mxu2 %v2026_v41  ;;  %729 = vmatpush.msrb.mxu3 %v2028_v42 }
  0x6c   :  { %670 = vmatpush.msrb.mxu0 %v2031_v43  ;;  %690 = vmatpush.msrb.mxu1 %v2033_v44 }
  0x6d   :  { %710 = vmatpush.msrb.mxu2 %v2038_v45  ;;  %730 = vmatpush.msrb.mxu3 %v2040_v46 }
  0x6e   :  { %671 = vmatpush.msrb.mxu0 %v2049_v48  ;;  %691 = vmatpush.msrb.mxu1 %v2051_v49 }
  0x6f   :  { %711 = vmatpush.msrb.mxu2 %v2057_v50  ;;  %731 = vmatpush.msrb.mxu3 %v2059_v51 }
  0x70   :  { %672 = vmatpush.msrb.mxu0 %v2063_v52  ;;  %692 = vmatpush.msrb.mxu1 %v2065_v53 }
  0x71   :  { %712 = vmatpush.msrb.mxu2 %v2069_v54  ;;  %732 = vmatpush.msrb.mxu3 %v2071_v55 }
  0x72   :  { %673 = vmatpush.msrb.mxu0 %v2074_v56  ;;  %693 = vmatpush.msrb.mxu1 %v2076_v57 }
  0x73   :  { %713 = vmatpush.msrb.mxu2 %v2081_v58  ;;  %733 = vmatpush.msrb.mxu3 %v2083_v59 }
  0x74   :  { %674 = vmatpush.msrb.mxu0 %v2092_v61  ;;  %694 = vmatpush.msrb.mxu1 %v2094_v62 }
  0x75   :  { %714 = vmatpush.msrb.mxu2 %v2100_v63  ;;  %734 = vmatpush.msrb.mxu3 %v2102_v0 }
  0x76   :  { %675 = vmatpush.msrb.mxu0 %v2106_v1  ;;  %695 = vmatpush.msrb.mxu1 %v2108_v2 }
  0x77   :  { %715 = vmatpush.msrb.mxu2 %v3009_v20  ;;  %735 = vmatpush.msrb.mxu3 %v2114_v4 }
  0x78   :  { %676 = vmatpush.msrb.mxu0 %v2117_v5  ;;  %696 = vmatpush.msrb.mxu1 %v2119_v6  ;;  %v57_v5 = vld [vmem:[%s2893_s3] sm:$0xf] }
  0x79   :  { %716 = vmatpush.msrb.mxu2 %v2124_v7  ;;  %736 = vmatpush.msrb.mxu3 %v3010_v8  ;;  %v59_v4 = vperm.slane %v57_v5, 0  ;;  %v60_v6 = vperm.slane %v57_v5, 1 }
  0x7a   :  { %677 = vmatpush.msrb.mxu0 %v2135_v34  ;;  %697 = vmatpush.msrb.mxu1 %v2137_v47 }
  0x7b   :  { %717 = vmatpush.msrb.mxu2 %v2143_v60  ;;  %737 = vmatpush.msrb.mxu3 %v2145_v3  ;;  %v2306_v60 = vperm.slane %v57_v5, 2  ;;  %v2308_v3 = vperm.slane %v57_v5, 3 }
  0x87   :  { %v109_v2 = vpop.f32.mrf.mxu0  ;;  %v150_v20 = vpop.f32.mrf.mxu1 }
  0x8e   :  { %v2298_v1 = vpop.f32.mrf.mxu2  ;;  %v2300_v7 = vpop.f32.mrf.mxu3 }
  0x8f   :  { %v112_v8 = vpop.f32.mrf.mxu0  ;;  %v153_v34 = vpop.f32.mrf.mxu1 }
  0x90   :  { %v2302_v0 = vadd.f32 %v112_v8, %v59_v4  ;;  %v2304_v47 = vadd.f32 %v153_v34, %v60_v6 }
  0x92   :  { %3011 = vst [vmem:[#allocation32_spill] sm:$0xff] %v2302_v0 }
  0x93   :  { %3012 = vst [vmem:[#allocation33_spill] sm:$0xff] %v2304_v47 }
  0x96   :  { %v194_v63 = vpop.f32.mrf.mxu2  ;;  %v235_v62 = vpop.f32.mrf.mxu3 }
  0x97   :  { %v2311_v61 = vadd.f32 %v194_v63, %v2306_v60  ;;  %v2314_v59 = vadd.f32 %v235_v62, %v2308_v3  ;;  %v115_v58 = vpop.f32.mrf.mxu0  ;;  %v156_v57 = vpop.f32.mrf.mxu1 }
  0x98   :  { %v2316_v56 = vadd.f32 %v115_v58, %v59_v4  ;;  %v2318_v8 = vadd.f32 %v156_v57, %v60_v6 }
  0x99   :  { %3013 = vst [vmem:[#allocation34_spill] sm:$0xff] %v2311_v61 }
  0x9a   :  { %3014 = vst [vmem:[#allocation35_spill] sm:$0xff] %v2314_v59 }
  0x9b   :  { %3015 = vst [vmem:[#allocation36_spill] sm:$0xff] %v2316_v56 }
  0x9c   :  { %3016 = vst [vmem:[#allocation37_spill] sm:$0xff] %v2318_v8 }
  0x9e   :  { %v197_v34 = vpop.f32.mrf.mxu2  ;;  %v238_v47 = vpop.f32.mrf.mxu3 }
  0x9f   :  { %v2321_v0 = vadd.f32 %v197_v34, %v2306_v60  ;;  %v2324_v5 = vadd.f32 %v238_v47, %v2308_v3  ;;  %v118_v55 = vpop.f32.mrf.mxu0  ;;  %v159_v63 = vpop.f32.mrf.mxu1 }
  0xa0   :  { %v2326_v61 = vadd.f32 %v118_v55, %v59_v4  ;;  %v2328_v62 = vadd.f32 %v159_v63, %v60_v6 }
  0xa1   :  { %3017 = vst [vmem:[#allocation38_spill] sm:$0xff] %v2321_v0 }
  0xa2   :  { %3018 = vst [vmem:[#allocation39_spill] sm:$0xff] %v2324_v5 }
  0xa3   :  { %3019 = vst [vmem:[#allocation40_spill] sm:$0xff] %v2326_v61 }
  0xa4   :  { %3020 = vst [vmem:[#allocation41_spill] sm:$0xff] %v2328_v62 }
  0xa6   :  { %v200_v59 = vpop.f32.mrf.mxu2  ;;  %v241_v54 = vpop.f32.mrf.mxu3 }
  0xa7   :  { %v2331_v58 = vadd.f32 %v200_v59, %v2306_v60  ;;  %v2334_v57 = vadd.f32 %v241_v54, %v2308_v3  ;;  %v121_v8 = vpop.f32.mrf.mxu0  ;;  %v162_v34 = vpop.f32.mrf.mxu1 }
  0xa8   :  { %v2336_v0 = vadd.f32 %v121_v8, %v59_v4  ;;  %v2338_v47 = vadd.f32 %v162_v34, %v60_v6 }
  0xa9   :  { %3021 = vst [vmem:[#allocation42_spill] sm:$0xff] %v2331_v58 }
  0xaa   :  { %3022 = vst [vmem:[#allocation43_spill] sm:$0xff] %v2334_v57 }
  0xab   :  { %3023 = vst [vmem:[#allocation44_spill] sm:$0xff] %v2336_v0 }
  0xac   :  { %3024 = vst [vmem:[#allocation45_spill] sm:$0xff] %v2338_v47 }
  0xae   :  { %v203_v5 = vpop.f32.mrf.mxu2  ;;  %v244_v56 = vpop.f32.mrf.mxu3 }
  0xaf   :  { %v2341_v55 = vadd.f32 %v203_v5, %v2306_v60  ;;  %v2344_v63 = vadd.f32 %v244_v56, %v2308_v3  ;;  %v124_v62 = vpop.f32.mrf.mxu0  ;;  %v165_v59 = vpop.f32.mrf.mxu1 }
  0xb0   :  { %v2346_v58 = vadd.f32 %v124_v62, %v59_v4  ;;  %v2348_v54 = vadd.f32 %v165_v59, %v60_v6 }
  0xb1   :  { %3025 = vst [vmem:[#allocation46_spill] sm:$0xff] %v2341_v55 }
  0xb2   :  { %3026 = vst [vmem:[#allocation47_spill] sm:$0xff] %v2344_v63 }
  0xb3   :  { %3027 = vst [vmem:[#allocation48_spill] sm:$0xff] %v2346_v58  ;;  %v151_v58 = vadd.f32 %v150_v20, %v60_v6 }
  0xb4   :  { %3028 = vst [vmem:[#allocation49_spill] sm:$0xff] %v2348_v54 }
  0xb6   :  { %v206_v57 = vpop.f32.mrf.mxu2  ;;  %v247_v61 = vpop.f32.mrf.mxu3 }
  0xb7   :  { %v2351_v8 = vadd.f32 %v206_v57, %v2306_v60  ;;  %v2354_v34 = vadd.f32 %v247_v61, %v2308_v3  ;;  %v127_v47 = vpop.f32.mrf.mxu0  ;;  %v168_v5 = vpop.f32.mrf.mxu1 }
  0xb8   :  { %v2356_v55 = vadd.f32 %v127_v47, %v59_v4  ;;  %v2358_v56 = vadd.f32 %v168_v5, %v60_v6 }
  0xb9   :  { %3029 = vst [vmem:[#allocation50_spill] sm:$0xff] %v2351_v8 }
  0xba   :  { %3030 = vst [vmem:[#allocation51_spill] sm:$0xff] %v2354_v34  ;;  %v110_v34 = vadd.f32 %v109_v2, %v59_v4 }
  0xbb   :  { %3031 = vst [vmem:[#allocation52_spill] sm:$0xff] %v2356_v55 }
  0xbc   :  { %3032 = vst [vmem:[#allocation53_spill] sm:$0xff] %v2358_v56 }
  0xbe   :  { %v209_v63 = vpop.f32.mrf.mxu2  ;;  %v250_v0 = vpop.f32.mrf.mxu3 }
  0xbf   :  { %v2361_v62 = vadd.f32 %v209_v63, %v2306_v60  ;;  %v2364_v59 = vadd.f32 %v250_v0, %v2308_v3  ;;  %v130_v54 = vpop.f32.mrf.mxu0  ;;  %v171_v57 = vpop.f32.mrf.mxu1 }
  0xc0   :  { %v2366_v8 = vadd.f32 %v130_v54, %v59_v4  ;;  %v2368_v61 = vadd.f32 %v171_v57, %v60_v6  ;;  %v192_v54 = vadd.f32 %v2298_v1, %v2306_v60 }
  0xc1   :  { %3033 = vst [vmem:[#allocation54_spill] sm:$0xff] %v2361_v62 }
  0xc2   :  { %3034 = vst [vmem:[#allocation55_spill] sm:$0xff] %v2364_v59 }
  0xc3   :  { %3035 = vst [vmem:[#allocation56_spill] sm:$0xff] %v2366_v8 }
  0xc4   :  { %3036 = vst [vmem:[#allocation57_spill] sm:$0xff] %v2368_v61 }
  0xc6   :  { %v212_v47 = vpop.f32.mrf.mxu2  ;;  %v253_v55 = vpop.f32.mrf.mxu3 }
  0xc7   :  { %v2371_v5 = vadd.f32 %v212_v47, %v2306_v60  ;;  %v2374_v56 = vadd.f32 %v253_v55, %v2308_v3  ;;  %v375_v63 = vpop.f32.mrf.mxu0  ;;  %v395_v62 = vpop.f32.mrf.mxu1 }
  0xc8   :  { %v438_v0 = vadd.f32 %v375_v63, %v110_v34  ;;  %v439_v59 = vadd.f32 %v395_v62, %v151_v58  ;;  %v233_v58 = vadd.f32 %v2300_v7, %v2308_v3 }
  0xc9   :  { %3037 = vst [vmem:[#allocation58_spill] sm:$0xff] %v2371_v5 }
  0xca   :  { %3038 = vst [vmem:[#allocation59_spill] sm:$0xff] %v2374_v56  ;;  %v1612_v53 = vmul.f32 -1.442695, %v438_v0  ;;  %v1613_v52 = vmul.f32 -1.442695, %v439_v59 }
  0xcc   :  { %1640 = vpow2.f32 %v1612_v53 }
  0xcd   :  { %1642 = vpow2.f32 %v1613_v52 }
  0xce   :  { %v415_v2 = vpop.f32.mrf.mxu2  ;;  %v435_v56 = vpop.f32.mrf.mxu3 }
  0xcf   :  { %v440_v4 = vadd.f32 %v415_v2, %v192_v54  ;;  %v441_v59 = vadd.f32 %v435_v56, %v233_v58 }
  0xd1   :  { %v1614_v6 = vmul.f32 -1.442695, %v440_v4 }
  0xd2   :  { %v1641_v20 = vpop.eup %1640 }
  0xd3   :  { %v1643_v57 = vpop.eup %1642  ;;  %v451_v47 = vadd.f32 1.0, %v1641_v20  ;;  %1644 = vpow2.f32 %v1614_v6 }
  0xd4   :  { %v452_v55 = vadd.f32 1.0, %v1643_v57 }
  0xd5   :  { %1646 = vrcp.f32 %v451_v47  ;;  %v465_v54 = vand.u32 2147483648, %v451_v47  ;;  %v463_v6 = vand.u32 2147483647, %v451_v47  ;;  %vm459_vm3 = vweird.f32 %v451_v47 }
  0xd6   :  { %1648 = vrcp.f32 %v452_v55  ;;  %v480_v2 = vand.u32 2147483648, %v452_v55  ;;  %v478_v57 = vand.u32 2147483647, %v452_v55  ;;  %vm474_vm4 = vweird.f32 %v452_v55 }
  0xd7   :  { %v466_v56 = vor.u32 1.1754944e-38, %v465_v54  ;;  %vm464_vm7 = vcmp.eq.f32.partialorder %v463_v6, 8.507059e+37 }
  0xd8   :  { %v481_v58 = vor.u32 1.1754944e-38, %v480_v2  ;;  %vm479_vm8 = vcmp.eq.f32.partialorder %v478_v57, 8.507059e+37 }
  0xd9   :  { %v1645_v34 = vpop.eup %1644 }
  0xda   :  { %v453_v53 = vadd.f32 1.0, %v1645_v34 }
  0xdb   :  { %v1647_v62 = vpop.eup %1646 }
  0xdc   :  { %v1649_v1 = vpop.eup %1648  ;;  %v455_v52 = vmul.f32 %v1647_v62, %v451_v47  ;;  %1650 = vrcp.f32 %v453_v53  ;;  %vm460_vm1 = vweird.f32 %v1647_v62  ;;  %vm489_vm10 = vweird.f32 %v453_v53 }
  0xdd   :  { %v470_v60 = vmul.f32 %v1649_v1, %v452_v55  ;;  %1652 = vtanh.f32 %v441_v59  ;;  %vm475_vm2 = vweird.f32 %v1649_v1  ;;  %vm461_vm5 = vmor %vm459_vm3, %vm460_vm1  ;;  %v495_v55 = vand.u32 2147483648, %v453_v53 }
  0xde   :  { %v456_v63 = vsub.f32 1.0, %v455_v52  ;;  %vm476_vm6 = vmor %vm474_vm4, %vm475_vm2  ;;  %v493_v54 = vand.u32 2147483647, %v453_v53 }
  0xdf   :  { %v471_v0 = vsub.f32 1.0, %v470_v60  ;;  %v496_v2 = vor.u32 1.1754944e-38, %v495_v55 }
  0xe0   :  { %v457_v4 = vmul.f32 %v1647_v62, %v456_v63  ;;  %vm494_vm12 = vcmp.eq.f32.partialorder %v493_v54, 8.507059e+37 }
  0xe1   :  { %v472_v20 = vmul.f32 %v1649_v1, %v471_v0 }
  0xe2   :  { %v1651_v5 = vpop.eup %1650  ;;  %v458_v3 = vadd.f32 %v1647_v62, %v457_v4 }
  0xe3   :  { %v485_v7 = vmul.f32 %v1651_v5, %v453_v53  ;;  %v473_v34 = vadd.f32 %v1649_v1, %v472_v20  ;;  %v1653_v59 = vpop.eup %1652  ;;  %vm490_vm9 = vweird.f32 %v1651_v5 }
  0xe4   :  { %v462_v52 = vsel %vm461_vm5, %v1647_v62, %v458_v3  ;;  %vm491_vm11 = vmor %vm489_vm10, %vm490_vm9 }
  0xe5   :  { %v486_v60 = vsub.f32 1.0, %v485_v7  ;;  %v467_v63 = vsel %vm464_vm7, %v466_v56, %v462_v52  ;;  %v477_v61 = vsel %vm476_vm6, %v1649_v1, %v473_v34  ;;  %v3068_v7 = vld [vmem:[#allocation35_spill] sm:$0xff] }
  0xe6   :  { %v482_v0 = vsel %vm479_vm8, %v481_v58, %v477_v61  ;;  %v501_v8 = vmul.f32 %v1653_v59, %v467_v63 }
  0xe7   :  { %v500_v51 = vmul.f32 0.0, %v482_v0  ;;  %v487_v50 = vmul.f32 %v1651_v5, %v486_v60 }
  0xe9   :  { %v2380_v4 = vadd.f32 %v501_v8, %v500_v51  ;;  %v488_v47 = vadd.f32 %v1651_v5, %v487_v50 }
  0xeb   :  { %1654 = vtanh.f32 %v2380_v4  ;;  %v492_v62 = vsel %vm491_vm11, %v1651_v5, %v488_v47 }
  0xec   :  { %v497_v1 = vsel %vm494_vm12, %v496_v2, %v492_v62 }
  0xf1   :  { %v1655_v6 = vpop.eup %1654 }
  0xf2   :  { %v504_v20 = vmul.f32 %v1655_v6, %v497_v1 }
  0xf4   :  { %526 = vmatmul.f32.vlgmr.msra.gmra.mxu0 %v504_v20  ;;  %546 = vmatmul.f32.vlgmr.msra.gmra.mxu1 %v504_v20 }
  0xf5   :  { %566 = vmatmul.f32.vlgmr.msra.gmra.mxu2 %v504_v20  ;;  %586 = vmatmul.f32.vlgmr.msra.gmra.mxu3 %v504_v20 }
  0xf6   :  { %814 = vmatpush.msra.mxu0 %v1922_v9  ;;  %834 = vmatpush.msra.mxu1 %v1924_v10  ;;  %v3039_v9 = vld [vmem:[#allocation6_spill] sm:$0xff]  ;;  %v3040_v10 = vld [vmem:[#allocation7_spill] sm:$0xff] }
  0xf7   :  { %854 = vmatpush.msra.mxu2 %v1928_v11  ;;  %874 = vmatpush.msra.mxu3 %v1940_v15  ;;  %v3041_v11 = vld [vmem:[#allocation8_spill] sm:$0xff] }
  0xf8   :  { %815 = vmatpush.msra.mxu0 %v1932_v12  ;;  %835 = vmatpush.msra.mxu1 %v1934_v13  ;;  %v3042_v12 = vld [vmem:[#allocation9_spill] sm:$0xff]  ;;  %v3043_v13 = vld [vmem:[#allocation10_spill] sm:$0xff]  ;;  %v3045_v15 = vld [vmem:[#allocation12_spill] sm:$0xff] }
  0xf9   :  { %855 = vmatpush.msra.mxu2 %v1938_v14  ;;  %875 = vmatpush.msra.mxu3 %v1948_v18  ;;  %v3044_v14 = vld [vmem:[#allocation11_spill] sm:$0xff] }
  0xfa   :  { %816 = vmatpush.msra.mxu0 %v1943_v16  ;;  %836 = vmatpush.msra.mxu1 %v1945_v17  ;;  %v3046_v16 = vld [vmem:[#allocation13_spill] sm:$0xff]  ;;  %v3047_v17 = vld [vmem:[#allocation14_spill] sm:$0xff]  ;;  %v3048_v18 = vld [vmem:[#allocation15_spill] sm:$0xff] }
  0xfb   :  { %856 = vmatpush.msra.mxu2 %v1952_v19  ;;  %876 = vmatpush.msra.mxu3 %v1959_v21  ;;  %v3049_v19 = vld [vmem:[#allocation16_spill] sm:$0xff]  ;;  %v3050_v21 = vld [vmem:[#allocation17_spill] sm:$0xff] }
  0xfc   :  { %817 = vmatpush.msra.mxu0 %v1963_v22  ;;  %837 = vmatpush.msra.mxu1 %v1965_v23  ;;  %v3051_v22 = vld [vmem:[#allocation18_spill] sm:$0xff]  ;;  %v3052_v23 = vld [vmem:[#allocation19_spill] sm:$0xff] }
  0xfd   :  { %857 = vmatpush.msra.mxu2 %v1971_v24  ;;  %877 = vmatpush.msra.mxu3 %v1973_v25  ;;  %v3053_v24 = vld [vmem:[#allocation20_spill] sm:$0xff]  ;;  %v3054_v25 = vld [vmem:[#allocation21_spill] sm:$0xff] }
  0xfe   :  { %818 = vmatpush.msra.mxu0 %v1977_v26  ;;  %838 = vmatpush.msra.mxu1 %v1979_v27  ;;  %v3055_v26 = vld [vmem:[#allocation22_spill] sm:$0xff]  ;;  %v3056_v27 = vld [vmem:[#allocation23_spill] sm:$0xff] }
  0xff   :  { %858 = vmatpush.msra.mxu2 %v1983_v28  ;;  %878 = vmatpush.msra.mxu3 %v1985_v29  ;;  %v3057_v28 = vld [vmem:[#allocation24_spill] sm:$0xff]  ;;  %v3058_v29 = vld [vmem:[#allocation25_spill] sm:$0xff] }
 0x100   :  { %819 = vmatpush.msra.mxu0 %v1988_v30  ;;  %839 = vmatpush.msra.mxu1 %v1990_v31  ;;  %v3059_v30 = vld [vmem:[#allocation26_spill] sm:$0xff]  ;;  %v3060_v31 = vld [vmem:[#allocation27_spill] sm:$0xff] }
 0x101   :  { %859 = vmatpush.msra.mxu2 %v1995_v32  ;;  %879 = vmatpush.msra.mxu3 %v1997_v33  ;;  %v3061_v32 = vld [vmem:[#allocation28_spill] sm:$0xff]  ;;  %v3062_v33 = vld [vmem:[#allocation29_spill] sm:$0xff] }
 0x102   :  { %820 = vmatpush.msra.mxu0 %v2006_v35  ;;  %840 = vmatpush.msra.mxu1 %v2008_v36  ;;  %v3063_v35 = vld [vmem:[#allocation30_spill] sm:$0xff]  ;;  %v3064_v36 = vld [vmem:[#allocation31_spill] sm:$0xff] }
 0x103   :  { %860 = vmatpush.msra.mxu2 %v2014_v37  ;;  %880 = vmatpush.msra.mxu3 %v2016_v38 }
 0x104   :  { %821 = vmatpush.msra.mxu0 %v2020_v39  ;;  %841 = vmatpush.msra.mxu1 %v2022_v40  ;;  %v3065_v39 = vld [vmem:[#allocation32_spill] sm:$0xff] }
 0x105   :  { %861 = vmatpush.msra.mxu2 %v2026_v41  ;;  %881 = vmatpush.msra.mxu3 %v2028_v42  ;;  %v3066_v41 = vld [vmem:[#allocation33_spill] sm:$0xff] }
 0x106   :  { %822 = vmatpush.msra.mxu0 %v2031_v43  ;;  %842 = vmatpush.msra.mxu1 %v2033_v44 }
 0x107   :  { %862 = vmatpush.msra.mxu2 %v2038_v45  ;;  %882 = vmatpush.msra.mxu3 %v2040_v46  ;;  %v3067_v46 = vld [vmem:[#allocation34_spill] sm:$0xff] }
 0x108   :  { %823 = vmatpush.msra.mxu0 %v2049_v48  ;;  %843 = vmatpush.msra.mxu1 %v2051_v49 }
 0x109   :  { %863 = vmatpush.msra.mxu2 %v3039_v9  ;;  %883 = vmatpush.msra.mxu3 %v3040_v10 }
 0x10a   :  { %824 = vmatpush.msra.mxu0 %v3041_v11  ;;  %844 = vmatpush.msra.mxu1 %v3042_v12 }
 0x10b   :  { %864 = vmatpush.msra.mxu2 %v3043_v13  ;;  %884 = vmatpush.msra.mxu3 %v3044_v14 }
 0x10c   :  { %825 = vmatpush.msra.mxu0 %v3045_v15  ;;  %845 = vmatpush.msra.mxu1 %v3046_v16 }
 0x10d   :  { %865 = vmatpush.msra.mxu2 %v3047_v17  ;;  %885 = vmatpush.msra.mxu3 %v3048_v18 }
 0x10e   :  { %826 = vmatpush.msra.mxu0 %v3049_v19  ;;  %846 = vmatpush.msra.mxu1 %v3050_v21 }
 0x10f   :  { %866 = vmatpush.msra.mxu2 %v3051_v22  ;;  %886 = vmatpush.msra.mxu3 %v3052_v23 }
 0x110   :  { %827 = vmatpush.msra.mxu0 %v3053_v24  ;;  %847 = vmatpush.msra.mxu1 %v3054_v25 }
 0x111   :  { %867 = vmatpush.msra.mxu2 %v3055_v26  ;;  %887 = vmatpush.msra.mxu3 %v3056_v27 }
 0x112   :  { %828 = vmatpush.msra.mxu0 %v3057_v28  ;;  %848 = vmatpush.msra.mxu1 %v3058_v29 }
 0x113   :  { %868 = vmatpush.msra.mxu2 %v3059_v30  ;;  %888 = vmatpush.msra.mxu3 %v3060_v31 }
 0x114   :  { %829 = vmatpush.msra.mxu0 %v3061_v32  ;;  %849 = vmatpush.msra.mxu1 %v3062_v33 }
 0x115   :  { %869 = vmatpush.msra.mxu2 %v3063_v35  ;;  %889 = vmatpush.msra.mxu3 %v3064_v36 }
 0x171   :  { %v527_v37 = vpop.f32.mrf.mxu0  ;;  %v547_v38 = vpop.f32.mrf.mxu1 }
 0x172   :  { %v590_v40 = vadd.f32 %v527_v37, %v3065_v39  ;;  %v591_v42 = vadd.f32 %v547_v38, %v3066_v41  ;;  %v2458_v37 = vld [vmem:[#allocation3 + $0x1e8] sm:$0xff]  ;;  %v2461_v38 = vld [vmem:[#allocation3 + $0x1f0] sm:$0xff]  ;;  %v2464_v39 = vld [vmem:[#allocation3 + $0x1f8] sm:$0xff] }
 0x173   :  { %v2470_v41 = vld [vmem:[#allocation3 + $0x1c8] sm:$0xff] }
 0x174   :  { %v1615_v43 = vmul.f32 -1.442695, %v590_v40  ;;  %v1616_v44 = vmul.f32 -1.442695, %v591_v42  ;;  %v2467_v40 = vld [vmem:[#allocation3 + $0x1c0] sm:$0xff]  ;;  %v2473_v42 = vld [vmem:[#allocation3 + $0x1d0] sm:$0xff] }
 0x176   :  { %1656 = vpow2.f32 %v1615_v43  ;;  %v2476_v43 = vld [vmem:[#allocation3 + $0x1d8] sm:$0xff] }
 0x177   :  { %1658 = vpow2.f32 %v1616_v44  ;;  %v2479_v44 = vld [vmem:[#allocation3 + $0x1a0] sm:$0xff] }
 0x178   :  { %v567_v45 = vpop.f32.mrf.mxu2  ;;  %v587_v5 = vpop.f32.mrf.mxu3 }
 0x179   :  { %v592_v48 = vadd.f32 %v567_v45, %v3067_v46  ;;  %v593_v56 = vadd.f32 %v587_v5, %v3068_v7  ;;  %v2482_v45 = vld [vmem:[#allocation3 + $0x1a8] sm:$0xff]  ;;  %v2485_v46 = vld [vmem:[#allocation3 + $0x1b0] sm:$0xff] }
 0x17a   :  { %v2506_v5 = vld [vmem:[#allocation3 + $0x168] sm:$0xff] }
 0x17b   :  { %v1617_v49 = vmul.f32 -1.442695, %v592_v48  ;;  %v2488_v48 = vld [vmem:[#allocation3 + $0x1b8] sm:$0xff]  ;;  %v2518_v7 = vld [vmem:[#allocation3 + $0x148] sm:$0xff] }
 0x17c   :  { %v1657_v50 = vpop.eup %1656 }
 0x17d   :  { %v1659_v51 = vpop.eup %1658  ;;  %v603_v8 = vadd.f32 1.0, %v1657_v50  ;;  %1660 = vpow2.f32 %v1617_v49  ;;  %v2491_v49 = vld [vmem:[#allocation3 + $0x180] sm:$0xff]  ;;  %v2494_v50 = vld [vmem:[#allocation3 + $0x188] sm:$0xff] }
 0x17e   :  { %v604_v61 = vadd.f32 1.0, %v1659_v51  ;;  %v2497_v51 = vld [vmem:[#allocation3 + $0x190] sm:$0xff] }
 0x17f   :  { %1662 = vrcp.f32 %v603_v8  ;;  %v617_v63 = vand.u32 2147483648, %v603_v8  ;;  %v615_v55 = vand.u32 2147483647, %v603_v8  ;;  %vm611_vm15 = vweird.f32 %v603_v8 }
 0x180   :  { %1664 = vrcp.f32 %v604_v61  ;;  %v632_v0 = vand.u32 2147483648, %v604_v61  ;;  %v630_v62 = vand.u32 2147483647, %v604_v61  ;;  %vm626_vm0 = vweird.f32 %v604_v61 }
 0x181   :  { %v618_v20 = vor.u32 1.1754944e-38, %v617_v63  ;;  %vm616_vm3 = vcmp.eq.f32.partialorder %v615_v55, 8.507059e+37  ;;  %v2539_v63 = vld [vmem:[#allocation3 + $0x100] sm:$0xff]  ;;  %v2548_v55 = vld [vmem:[#allocation3 + $0x118] sm:$0xff] }
 0x182   :  { %v633_v10 = vor.u32 1.1754944e-38, %v632_v0  ;;  %vm631_vm4 = vcmp.eq.f32.partialorder %v630_v62, 8.507059e+37  ;;  %v2542_v0 = vld [vmem:[#allocation3 + $0x108] sm:$0xff] }
 0x183   :  { %v1661_v53 = vpop.eup %1660  ;;  %v2554_v62 = vld [vmem:[#allocation3 + $0xe8] sm:$0xff] }
 0x184   :  { %v605_v57 = vadd.f32 1.0, %v1661_v53  ;;  %v2509_v53 = vld [vmem:[#allocation3 + $0x170] sm:$0xff] }
 0x185   :  { %v1663_v3 = vpop.eup %1662 }
 0x186   :  { %v1665_v34 = vpop.eup %1664  ;;  %v607_v58 = vmul.f32 %v1663_v3, %v603_v8  ;;  %1666 = vrcp.f32 %v605_v57  ;;  %vm612_vm13 = vweird.f32 %v1663_v3  ;;  %v647_v23 = vand.u32 2147483648, %v605_v57  ;;  %v2500_v8 = vld [vmem:[#allocation3 + $0x198] sm:$0xff] }
 0x187   :  { %v622_v52 = vmul.f32 %v1665_v34, %v604_v61  ;;  %1668 = vtanh.f32 %v593_v56  ;;  %vm627_vm14 = vweird.f32 %v1665_v34  ;;  %vm613_vm1 = vmor %vm611_vm15, %vm612_vm13  ;;  %vm641_vm6 = vweird.f32 %v605_v57  ;;  %v2503_v61 = vld [vmem:[#allocation3 + $0x160] sm:$0xff]  ;;  %v2521_v56 = vld [vmem:[#allocation3 + $0x150] sm:$0xff] }
 0x188   :  { %v608_v59 = vsub.f32 1.0, %v607_v58  ;;  %vm628_vm2 = vmor %vm626_vm0, %vm627_vm14  ;;  %v645_v24 = vand.u32 2147483647, %v605_v57  ;;  %v648_v26 = vor.u32 1.1754944e-38, %v647_v23  ;;  %v2527_v58 = vld [vmem:[#allocation3 + $0x120] sm:$0xff]  ;;  %v2605_v23 = vld [vmem:[#allocation3 + $0x70] sm:$0xff] }
 0x189   :  { %v623_v60 = vsub.f32 1.0, %v622_v52  ;;  %v2530_v52 = vld [vmem:[#allocation3 + $0x128] sm:$0xff]  ;;  %3081 = vst [vmem:[#allocation18_spill] sm:$0xff] %v2605_v23 }
 0x18a   :  { %v609_v47 = vmul.f32 %v1663_v3, %v608_v59  ;;  %vm646_vm8 = vcmp.eq.f32.partialorder %v645_v24, 8.507059e+37  ;;  %v2533_v59 = vld [vmem:[#allocation3 + $0x130] sm:$0xff]  ;;  %v2608_v24 = vld [vmem:[#allocation3 + $0x78] sm:$0xff] }
 0x18b   :  { %v624_v54 = vmul.f32 %v1665_v34, %v623_v60  ;;  %v2536_v60 = vld [vmem:[#allocation3 + $0x138] sm:$0xff]  ;;  %3082 = vst [vmem:[#allocation19_spill] sm:$0xff] %v2608_v24 }
 0x18c   :  { %v1667_v2 = vpop.eup %1666  ;;  %v610_v6 = vadd.f32 %v1663_v3, %v609_v47  ;;  %v2545_v47 = vld [vmem:[#allocation3 + $0x110] sm:$0xff] }
 0x18d   :  { %v637_v1 = vmul.f32 %v1667_v2, %v605_v57  ;;  %v625_v9 = vadd.f32 %v1665_v34, %v624_v54  ;;  %v1669_v12 = vpop.eup %1668  ;;  %vm642_vm5 = vweird.f32 %v1667_v2  ;;  %v2512_v57 = vld [vmem:[#allocation3 + $0x178] sm:$0xff]  ;;  %v2551_v54 = vld [vmem:[#allocation3 + $0xe0] sm:$0xff] }
 0x18e   :  { %v614_v11 = vsel %vm613_vm1, %v1663_v3, %v610_v6  ;;  %vm643_vm7 = vmor %vm641_vm6, %vm642_vm5  ;;  %v2515_v3 = vld [vmem:[#allocation3 + $0x140] sm:$0xff]  ;;  %v2560_v6 = vld [vmem:[#allocation3 + $0xf8] sm:$0xff] }
 0x18f   :  { %v638_v13 = vsub.f32 1.0, %v637_v1  ;;  %v619_v14 = vsel %vm616_vm3, %v618_v20, %v614_v11  ;;  %v629_v15 = vsel %vm628_vm2, %v1665_v34, %v625_v9  ;;  %v2524_v34 = vld [vmem:[#allocation3 + $0x158] sm:$0xff]  ;;  %v2563_v1 = vld [vmem:[#allocation3 + $0xc0] sm:$0xff]  ;;  %v2566_v20 = vld [vmem:[#allocation3 + $0xc8] sm:$0xff] }
 0x190   :  { %v634_v16 = vsel %vm631_vm4, %v633_v10, %v629_v15  ;;  %v653_v17 = vmul.f32 %v1669_v12, %v619_v14  ;;  %v2569_v9 = vld [vmem:[#allocation3 + $0xd0] sm:$0xff]  ;;  %v2572_v10 = vld [vmem:[#allocation3 + $0xd8] sm:$0xff]  ;;  %v2575_v11 = vld [vmem:[#allocation3 + $0xa0] sm:$0xff] }
 0x191   :  { %v652_v18 = vmul.f32 %v634_v16, %v2380_v4  ;;  %v639_v19 = vmul.f32 %v1667_v2, %v638_v13  ;;  %v2455_v4 = vld [vmem:[#allocation3 + $0x1e0] sm:$0xff]  ;;  %3069 = vst [vmem:[#allocation6_spill] sm:$0xff] %v2569_v9  ;;  %v2578_v12 = vld [vmem:[#allocation3 + $0xa8] sm:$0xff]  ;;  %v2581_v13 = vld [vmem:[#allocation3 + $0xb0] sm:$0xff] }
 0x192   :  { %3070 = vst [vmem:[#allocation7_spill] sm:$0xff] %v2572_v10  ;;  %v2584_v14 = vld [vmem:[#allocation3 + $0xb8] sm:$0xff]  ;;  %v2587_v15 = vld [vmem:[#allocation3 + $0x80] sm:$0xff]  ;;  %v2590_v16 = vld [vmem:[#allocation3 + $0x88] sm:$0xff] }
 0x193   :  { %v2452_v21 = vadd.f32 %v653_v17, %v652_v18  ;;  %v640_v22 = vadd.f32 %v1667_v2, %v639_v19  ;;  %3071 = vst [vmem:[#allocation8_spill] sm:$0xff] %v2575_v11  ;;  %v2593_v17 = vld [vmem:[#allocation3 + $0x90] sm:$0xff]  ;;  %v2596_v18 = vld [vmem:[#allocation3 + $0x98] sm:$0xff]  ;;  %v2599_v19 = vld [vmem:[#allocation3 + $0x60] sm:$0xff] }
 0x194   :  { %3072 = vst [vmem:[#allocation9_spill] sm:$0xff] %v2578_v12 }
 0x195   :  { %1670 = vtanh.f32 %v2452_v21  ;;  %v644_v25 = vsel %vm643_vm7, %v1667_v2, %v640_v22  ;;  %v2557_v2 = vld [vmem:[#allocation3 + $0xf0] sm:$0xff]  ;;  %3073 = vst [vmem:[#allocation10_spill] sm:$0xff] %v2581_v13  ;;  %v2602_v22 = vld [vmem:[#allocation3 + $0x68] sm:$0xff] }
 0x196   :  { %v649_v28 = vsel %vm646_vm8, %v648_v26, %v644_v25  ;;  %3074 = vst [vmem:[#allocation11_spill] sm:$0xff] %v2584_v14  ;;  %v2611_v25 = vld [vmem:[#allocation3 + $0x40] sm:$0xff]  ;;  %v2614_v26 = vld [vmem:[#allocation3 + $0x48] sm:$0xff] }
 0x197   :  { %3075 = vst [vmem:[#allocation12_spill] sm:$0xff] %v2587_v15 }
 0x198   :  { %3076 = vst [vmem:[#allocation13_spill] sm:$0xff] %v2590_v16 }
 0x199   :  { %3077 = vst [vmem:[#allocation14_spill] sm:$0xff] %v2593_v17 }
 0x19a   :  { %3078 = vst [vmem:[#allocation15_spill] sm:$0xff] %v2596_v18 }
 0x19b   :  { %v1671_v27 = vpop.eup %1670  ;;  %3079 = vst [vmem:[#allocation16_spill] sm:$0xff] %v2599_v19 }
 0x19c   :  { %v656_v29 = vmul.f32 %v1671_v27, %v649_v28  ;;  %3080 = vst [vmem:[#allocation17_spill] sm:$0xff] %v2602_v22  ;;  %v2617_v27 = vld [vmem:[#allocation3 + $0x50] sm:$0xff]  ;;  %v2620_v28 = vld [vmem:[#allocation3 + $0x58] sm:$0xff] }
 0x19d   :  { %3083 = vst [vmem:[#allocation20_spill] sm:$0xff] %v2611_v25 }
 0x19e   :  { %678 = vmatmul.f32.vlgmr.msrb.gmra.mxu0 %v656_v29  ;;  %698 = vmatmul.f32.vlgmr.msrb.gmra.mxu1 %v656_v29  ;;  %3084 = vst [vmem:[#allocation21_spill] sm:$0xff] %v2614_v26 }
 0x19f   :  { %718 = vmatmul.f32.vlgmr.msrb.gmra.mxu2 %v656_v29  ;;  %738 = vmatmul.f32.vlgmr.msrb.gmra.mxu3 %v656_v29  ;;  %3085 = vst [vmem:[#allocation22_spill] sm:$0xff] %v2617_v27  ;;  %v2623_v29 = vld [vmem:[#allocation3 + $0x20] sm:$0xff] }
 0x1a0   :  { %966 = vmatpush.msrb.mxu0 %v2455_v4  ;;  %986 = vmatpush.msrb.mxu1 %v2458_v37  ;;  %3086 = vst [vmem:[#allocation23_spill] sm:$0xff] %v2620_v28 }
 0x1a1   :  { %1006 = vmatpush.msrb.mxu2 %v2461_v38  ;;  %1026 = vmatpush.msrb.mxu3 %v2464_v39  ;;  %3087 = vst [vmem:[#allocation24_spill] sm:$0xff] %v2623_v29 }
 0x1a2   :  { %967 = vmatpush.msrb.mxu0 %v2467_v40  ;;  %987 = vmatpush.msrb.mxu1 %v2470_v41 }
 0x1a3   :  { %1007 = vmatpush.msrb.mxu2 %v2473_v42  ;;  %1027 = vmatpush.msrb.mxu3 %v2476_v43 }
 0x1a4   :  { %968 = vmatpush.msrb.mxu0 %v2479_v44  ;;  %988 = vmatpush.msrb.mxu1 %v2482_v45 }
 0x1a5   :  { %1008 = vmatpush.msrb.mxu2 %v2485_v46  ;;  %1028 = vmatpush.msrb.mxu3 %v2488_v48 }
 0x1a6   :  { %969 = vmatpush.msrb.mxu0 %v2491_v49  ;;  %989 = vmatpush.msrb.mxu1 %v2494_v50 }
 0x1a7   :  { %1009 = vmatpush.msrb.mxu2 %v2497_v51  ;;  %1029 = vmatpush.msrb.mxu3 %v2500_v8 }
 0x1a8   :  { %970 = vmatpush.msrb.mxu0 %v2503_v61  ;;  %990 = vmatpush.msrb.mxu1 %v2506_v5 }
 0x1a9   :  { %1010 = vmatpush.msrb.mxu2 %v2509_v53  ;;  %1030 = vmatpush.msrb.mxu3 %v2512_v57 }
 0x1aa   :  { %971 = vmatpush.msrb.mxu0 %v2515_v3  ;;  %991 = vmatpush.msrb.mxu1 %v2518_v7 }
 0x1ab   :  { %1011 = vmatpush.msrb.mxu2 %v2521_v56  ;;  %1031 = vmatpush.msrb.mxu3 %v2524_v34 }
 0x1ac   :  { %972 = vmatpush.msrb.mxu0 %v2527_v58  ;;  %992 = vmatpush.msrb.mxu1 %v2530_v52 }
 0x1ad   :  { %1012 = vmatpush.msrb.mxu2 %v2533_v59  ;;  %1032 = vmatpush.msrb.mxu3 %v2536_v60 }
 0x1ae   :  { %973 = vmatpush.msrb.mxu0 %v2539_v63  ;;  %993 = vmatpush.msrb.mxu1 %v2542_v0 }
 0x1af   :  { %1013 = vmatpush.msrb.mxu2 %v2545_v47  ;;  %1033 = vmatpush.msrb.mxu3 %v2548_v55 }
 0x1b0   :  { %974 = vmatpush.msrb.mxu0 %v2551_v54  ;;  %994 = vmatpush.msrb.mxu1 %v2554_v62 }
 0x1b1   :  { %1014 = vmatpush.msrb.mxu2 %v2557_v2  ;;  %1034 = vmatpush.msrb.mxu3 %v2560_v6 }
 0x1b2   :  { %975 = vmatpush.msrb.mxu0 %v2563_v1  ;;  %995 = vmatpush.msrb.mxu1 %v2566_v20 }
 0x1b3   :  { %1015 = vmatpush.msrb.mxu2 %v2569_v9  ;;  %1035 = vmatpush.msrb.mxu3 %v2572_v10 }
 0x1b4   :  { %976 = vmatpush.msrb.mxu0 %v2575_v11  ;;  %996 = vmatpush.msrb.mxu1 %v2578_v12 }
 0x1b5   :  { %1016 = vmatpush.msrb.mxu2 %v2581_v13  ;;  %1036 = vmatpush.msrb.mxu3 %v2584_v14 }
 0x1b6   :  { %977 = vmatpush.msrb.mxu0 %v2587_v15  ;;  %997 = vmatpush.msrb.mxu1 %v2590_v16 }
 0x1b7   :  { %1017 = vmatpush.msrb.mxu2 %v2593_v17  ;;  %1037 = vmatpush.msrb.mxu3 %v2596_v18 }
 0x1b8   :  { %978 = vmatpush.msrb.mxu0 %v2599_v19  ;;  %998 = vmatpush.msrb.mxu1 %v2602_v22 }
 0x1b9   :  { %1018 = vmatpush.msrb.mxu2 %v2605_v23  ;;  %1038 = vmatpush.msrb.mxu3 %v2608_v24  ;;  %v2626_v24 = vld [vmem:[#allocation3 + $0x28] sm:$0xff] }
 0x1ba   :  { %979 = vmatpush.msrb.mxu0 %v2611_v25  ;;  %999 = vmatpush.msrb.mxu1 %v2614_v26  ;;  %3088 = vst [vmem:[#allocation25_spill] sm:$0xff] %v2626_v24  ;;  %v3089_v26 = vld [vmem:[#allocation36_spill] sm:$0xff]  ;;  %v3090_v25 = vld [vmem:[#allocation37_spill] sm:$0xff] }
 0x1bb   :  { %1019 = vmatpush.msrb.mxu2 %v2617_v27  ;;  %1039 = vmatpush.msrb.mxu3 %v2620_v28 }
 0x1bc   :  { %980 = vmatpush.msrb.mxu0 %v2623_v29  ;;  %1000 = vmatpush.msrb.mxu1 %v2626_v24 }
 0x1bd   :  { %1020 = vmatpush.msrb.mxu2 %v3059_v30  ;;  %1040 = vmatpush.msrb.mxu3 %v3060_v31  ;;  %v3091_v31 = vld [vmem:[#allocation38_spill] sm:$0xff] }
 0x1be   :  { %981 = vmatpush.msrb.mxu0 %v3061_v32  ;;  %1001 = vmatpush.msrb.mxu1 %v3062_v33 }
 0x1bf   :  { %1021 = vmatpush.msrb.mxu2 %v3063_v35  ;;  %1041 = vmatpush.msrb.mxu3 %v3064_v36 }
 0x21b   :  { %v679_v28 = vpop.f32.mrf.mxu0  ;;  %v699_v27 = vpop.f32.mrf.mxu1 }
 0x21c   :  { %v742_v29 = vadd.f32 %v679_v28, %v3089_v26  ;;  %v743_v23 = vadd.f32 %v699_v27, %v3090_v25  ;;  %v3092_v25 = vld [vmem:[#allocation39_spill] sm:$0xff] }
 0x21e   :  { %v1618_v22 = vmul.f32 -1.442695, %v742_v29  ;;  %v1619_v24 = vmul.f32 -1.442695, %v743_v23 }
 0x220   :  { %1672 = vpow2.f32 %v1618_v22 }
 0x221   :  { %1674 = vpow2.f32 %v1619_v24 }
 0x222   :  { %v719_v30 = vpop.f32.mrf.mxu2  ;;  %v739_v36 = vpop.f32.mrf.mxu3 }
 0x223   :  { %v744_v19 = vadd.f32 %v719_v30, %v3091_v31  ;;  %v745_v27 = vadd.f32 %v739_v36, %v3092_v25 }
 0x225   :  { %v1620_v32 = vmul.f32 -1.442695, %v744_v19 }
 0x226   :  { %v1673_v18 = vpop.eup %1672 }
 0x227   :  { %v1675_v33 = vpop.eup %1674  ;;  %v755_v17 = vadd.f32 1.0, %v1673_v18  ;;  %1676 = vpow2.f32 %v1620_v32 }
 0x228   :  { %v756_v35 = vadd.f32 1.0, %v1675_v33 }
 0x229   :  { %1678 = vrcp.f32 %v755_v17  ;;  %v769_v19 = vand.u32 2147483648, %v755_v17  ;;  %v767_v32 = vand.u32 2147483647, %v755_v17  ;;  %vm763_vm11 = vweird.f32 %v755_v17 }
 0x22a   :  { %1680 = vrcp.f32 %v756_v35  ;;  %v784_v31 = vand.u32 2147483648, %v756_v35  ;;  %v782_v15 = vand.u32 2147483647, %v756_v35  ;;  %vm778_vm12 = vweird.f32 %v756_v35 }
 0x22b   :  { %v770_v25 = vor.u32 1.1754944e-38, %v769_v19  ;;  %vm768_vm15 = vcmp.eq.f32.partialorder %v767_v32, 8.507059e+37 }
 0x22c   :  { %vm783_vm0 = vcmp.eq.f32.partialorder %v782_v15, 8.507059e+37 }
 0x22d   :  { %v1677_v16 = vpop.eup %1676 }
 0x22e   :  { %v757_v26 = vadd.f32 1.0, %v1677_v16 }
 0x22f   :  { %v1679_v28 = vpop.eup %1678 }
 0x230   :  { %v1681_v23 = vpop.eup %1680  ;;  %v759_v22 = vmul.f32 %v1679_v28, %v755_v17  ;;  %1682 = vrcp.f32 %v757_v26  ;;  %vm764_vm9 = vweird.f32 %v1679_v28  ;;  %v799_v19 = vand.u32 2147483648, %v757_v26 }
 0x231   :  { %v774_v24 = vmul.f32 %v1681_v23, %v756_v35  ;;  %1684 = vtanh.f32 %v745_v27  ;;  %vm779_vm10 = vweird.f32 %v1681_v23  ;;  %vm765_vm13 = vmor %vm763_vm11, %vm764_vm9  ;;  %vm793_vm2 = vweird.f32 %v757_v26 }
 0x232   :  { %v760_v29 = vsub.f32 1.0, %v759_v22  ;;  %vm780_vm14 = vmor %vm778_vm12, %vm779_vm10  ;;  %v785_v22 = vor.u32 1.1754944e-38, %v784_v31  ;;  %v800_v32 = vor.u32 1.1754944e-38, %v799_v19  ;;  %v3111_v19 = vld [vmem:[#allocation24_spill] sm:$0xff] }
 0x233   :  { %v775_v30 = vsub.f32 1.0, %v774_v24 }
 0x234   :  { %v761_v18 = vmul.f32 %v1679_v28, %v760_v29 }
 0x235   :  { %v776_v33 = vmul.f32 %v1681_v23, %v775_v30 }
 0x236   :  { %v1683_v14 = vpop.eup %1682  ;;  %v762_v16 = vadd.f32 %v1679_v28, %v761_v18 }
 0x237   :  { %v789_v36 = vmul.f32 %v1683_v14, %v757_v26  ;;  %v777_v13 = vadd.f32 %v1681_v23, %v776_v33  ;;  %v1685_v27 = vpop.eup %1684  ;;  %vm794_vm1 = vweird.f32 %v1683_v14  ;;  %v3100_v33 = vld [vmem:[#allocation13_spill] sm:$0xff] }
 0x238   :  { %v766_v24 = vsel %vm765_vm13, %v1679_v28, %v762_v16  ;;  %v797_v28 = vand.u32 2147483647, %v757_v26  ;;  %vm795_vm3 = vmor %vm793_vm2, %vm794_vm1  ;;  %v3098_v26 = vld [vmem:[#allocation11_spill] sm:$0xff]  ;;  %v3101_v16 = vld [vmem:[#allocation14_spill] sm:$0xff] }
 0x239   :  { %v790_v12 = vsub.f32 1.0, %v789_v36  ;;  %v771_v29 = vsel %vm768_vm15, %v770_v25, %v766_v24  ;;  %v781_v11 = vsel %vm780_vm14, %v1681_v23, %v777_v13  ;;  %v3099_v23 = vld [vmem:[#allocation12_spill] sm:$0xff]  ;;  %v3102_v36 = vld [vmem:[#allocation15_spill] sm:$0xff]  ;;  %v3105_v24 = vld [vmem:[#allocation18_spill] sm:$0xff] }
 0x23a   :  { %v786_v30 = vsel %vm783_vm0, %v785_v22, %v781_v11  ;;  %v805_v10 = vmul.f32 %v1685_v27, %v771_v29  ;;  %vm798_vm4 = vcmp.eq.f32.partialorder %v797_v28, 8.507059e+37  ;;  %v3103_v25 = vld [vmem:[#allocation16_spill] sm:$0xff]  ;;  %v3104_v22 = vld [vmem:[#allocation17_spill] sm:$0xff]  ;;  %v3106_v27 = vld [vmem:[#allocation19_spill] sm:$0xff] }
 0x23b   :  { %v804_v9 = vmul.f32 %v786_v30, %v2452_v21  ;;  %v791_v18 = vmul.f32 %v1683_v14, %v790_v12  ;;  %v3093_v21 = vld [vmem:[#allocation6_spill] sm:$0xff]  ;;  %v3096_v12 = vld [vmem:[#allocation9_spill] sm:$0xff]  ;;  %v3107_v29 = vld [vmem:[#allocation20_spill] sm:$0xff] }
 0x23c   :  { %v3108_v30 = vld [vmem:[#allocation21_spill] sm:$0xff] }
 0x23d   :  { %v2640_v17 = vadd.f32 %v805_v10, %v804_v9  ;;  %v792_v35 = vadd.f32 %v1683_v14, %v791_v18  ;;  %v3094_v9 = vld [vmem:[#allocation7_spill] sm:$0xff]  ;;  %v3095_v10 = vld [vmem:[#allocation8_spill] sm:$0xff]  ;;  %v3109_v18 = vld [vmem:[#allocation22_spill] sm:$0xff] }
 0x23e   :  { %v3112_v28 = vld [vmem:[#allocation25_spill] sm:$0xff] }
 0x23f   :  { %1686 = vtanh.f32 %v2640_v17  ;;  %v796_v31 = vsel %vm795_vm3, %v1683_v14, %v792_v35  ;;  %v3097_v14 = vld [vmem:[#allocation10_spill] sm:$0xff]  ;;  %v3110_v35 = vld [vmem:[#allocation23_spill] sm:$0xff] }
 0x240   :  { %v801_v15 = vsel %vm798_vm4, %v800_v32, %v796_v31  ;;  %v2701_v31 = vld [vmem:[#allocation3 + $0x30] sm:$0xff]  ;;  %v2704_v32 = vld [vmem:[#allocation3 + $0x38] sm:$0xff] }
 0x241   :  { %3113 = vst [vmem:[#allocation26_spill] sm:$0xff] %v2701_v31 }
 0x242   :  { %3114 = vst [vmem:[#allocation27_spill] sm:$0xff] %v2704_v32 }
 0x245   :  { %v1687_v13 = vpop.eup %1686 }
 0x246   :  { %v808_v11 = vmul.f32 %v1687_v13, %v801_v15  ;;  %v2707_v13 = vld [vmem:[#allocation3] sm:$0xff]  ;;  %v2710_v15 = vld [vmem:[#allocation3 + $0x8] sm:$0xff] }
 0x247   :  { %3115 = vst [vmem:[#allocation28_spill] sm:$0xff] %v2707_v13 }
 0x248   :  { %830 = vmatmul.f32.vlgmr.msra.gmra.mxu0 %v808_v11  ;;  %850 = vmatmul.f32.vlgmr.msra.gmra.mxu1 %v808_v11  ;;  %3116 = vst [vmem:[#allocation29_spill] sm:$0xff] %v2710_v15 }
 0x249   :  { %870 = vmatmul.f32.vlgmr.msra.gmra.mxu2 %v808_v11  ;;  %890 = vmatmul.f32.vlgmr.msra.gmra.mxu3 %v808_v11  ;;  %v2713_v11 = vld [vmem:[#allocation3 + $0x10] sm:$0xff] }
 0x24a   :  { %1118 = vmatpush.msra.mxu0 %v2455_v4  ;;  %1138 = vmatpush.msra.mxu1 %v2458_v37  ;;  %3117 = vst [vmem:[#allocation30_spill] sm:$0xff] %v2713_v11 }
 0x24b   :  { %1158 = vmatpush.msra.mxu2 %v2461_v38  ;;  %1178 = vmatpush.msra.mxu3 %v2464_v39 }
 0x24c   :  { %1119 = vmatpush.msra.mxu0 %v2467_v40  ;;  %1139 = vmatpush.msra.mxu1 %v2470_v41 }
 0x24d   :  { %1159 = vmatpush.msra.mxu2 %v2473_v42  ;;  %1179 = vmatpush.msra.mxu3 %v2476_v43 }
 0x24e   :  { %1120 = vmatpush.msra.mxu0 %v2479_v44  ;;  %1140 = vmatpush.msra.mxu1 %v2482_v45 }
 0x24f   :  { %1160 = vmatpush.msra.mxu2 %v2485_v46  ;;  %1180 = vmatpush.msra.mxu3 %v2488_v48 }
 0x250   :  { %1121 = vmatpush.msra.mxu0 %v2491_v49  ;;  %1141 = vmatpush.msra.mxu1 %v2494_v50 }
 0x251   :  { %1161 = vmatpush.msra.mxu2 %v2497_v51  ;;  %1181 = vmatpush.msra.mxu3 %v2500_v8 }
 0x252   :  { %1122 = vmatpush.msra.mxu0 %v2503_v61  ;;  %1142 = vmatpush.msra.mxu1 %v2506_v5 }
 0x253   :  { %1162 = vmatpush.msra.mxu2 %v2509_v53  ;;  %1182 = vmatpush.msra.mxu3 %v2512_v57 }
 0x254   :  { %1123 = vmatpush.msra.mxu0 %v2515_v3  ;;  %1143 = vmatpush.msra.mxu1 %v2518_v7 }
 0x255   :  { %1163 = vmatpush.msra.mxu2 %v2521_v56  ;;  %1183 = vmatpush.msra.mxu3 %v2524_v34 }
 0x256   :  { %1124 = vmatpush.msra.mxu0 %v2527_v58  ;;  %1144 = vmatpush.msra.mxu1 %v2530_v52 }
 0x257   :  { %1164 = vmatpush.msra.mxu2 %v2533_v59  ;;  %1184 = vmatpush.msra.mxu3 %v2536_v60 }
 0x258   :  { %1125 = vmatpush.msra.mxu0 %v2539_v63  ;;  %1145 = vmatpush.msra.mxu1 %v2542_v0 }
 0x259   :  { %1165 = vmatpush.msra.mxu2 %v2545_v47  ;;  %1185 = vmatpush.msra.mxu3 %v2548_v55 }
 0x25a   :  { %1126 = vmatpush.msra.mxu0 %v2551_v54  ;;  %1146 = vmatpush.msra.mxu1 %v2554_v62 }
 0x25b   :  { %1166 = vmatpush.msra.mxu2 %v2557_v2  ;;  %1186 = vmatpush.msra.mxu3 %v2560_v6 }
 0x25c   :  { %1127 = vmatpush.msra.mxu0 %v2563_v1  ;;  %1147 = vmatpush.msra.mxu1 %v2566_v20 }
 0x25d   :  { %1167 = vmatpush.msra.mxu2 %v3093_v21  ;;  %1187 = vmatpush.msra.mxu3 %v3094_v9 }
 0x25e   :  { %1128 = vmatpush.msra.mxu0 %v3095_v10  ;;  %1148 = vmatpush.msra.mxu1 %v3096_v12 }
 0x25f   :  { %1168 = vmatpush.msra.mxu2 %v3097_v14  ;;  %1188 = vmatpush.msra.mxu3 %v3098_v26 }
 0x260   :  { %1129 = vmatpush.msra.mxu0 %v3099_v23  ;;  %1149 = vmatpush.msra.mxu1 %v3100_v33 }
 0x261   :  { %1169 = vmatpush.msra.mxu2 %v3101_v16  ;;  %1189 = vmatpush.msra.mxu3 %v3102_v36 }
 0x262   :  { %1130 = vmatpush.msra.mxu0 %v3103_v25  ;;  %1150 = vmatpush.msra.mxu1 %v3104_v22 }
 0x263   :  { %1170 = vmatpush.msra.mxu2 %v3105_v24  ;;  %1190 = vmatpush.msra.mxu3 %v3106_v27 }
 0x264   :  { %1131 = vmatpush.msra.mxu0 %v3107_v29  ;;  %1151 = vmatpush.msra.mxu1 %v3108_v30 }
 0x265   :  { %1171 = vmatpush.msra.mxu2 %v3109_v18  ;;  %1191 = vmatpush.msra.mxu3 %v3110_v35  ;;  %v3119_v35 = vld [vmem:[#allocation40_spill] sm:$0xff]  ;;  %v3120_v18 = vld [vmem:[#allocation41_spill] sm:$0xff] }
 0x266   :  { %1132 = vmatpush.msra.mxu0 %v3111_v19  ;;  %1152 = vmatpush.msra.mxu1 %v3112_v28  ;;  %v2716_v28 = vld [vmem:[#allocation3 + $0x18] sm:$0xff] }
 0x267   :  { %1172 = vmatpush.msra.mxu2 %v2701_v31  ;;  %1192 = vmatpush.msra.mxu3 %v2704_v32  ;;  %3118 = vst [vmem:[#allocation31_spill] sm:$0xff] %v2716_v28 }
 0x268   :  { %1133 = vmatpush.msra.mxu0 %v2707_v13  ;;  %1153 = vmatpush.msra.mxu1 %v2710_v15  ;;  %v3121_v15 = vld [vmem:[#allocation42_spill] sm:$0xff] }
 0x269   :  { %1173 = vmatpush.msra.mxu2 %v2713_v11  ;;  %1193 = vmatpush.msra.mxu3 %v2716_v28 }
 0x2c5   :  { %v831_v31 = vpop.f32.mrf.mxu0  ;;  %v851_v19 = vpop.f32.mrf.mxu1 }
 0x2c6   :  { %v894_v32 = vadd.f32 %v831_v31, %v3119_v35  ;;  %v895_v30 = vadd.f32 %v851_v19, %v3120_v18  ;;  %v3122_v18 = vld [vmem:[#allocation43_spill] sm:$0xff] }
 0x2c8   :  { %v1621_v29 = vmul.f32 -1.442695, %v894_v32  ;;  %v1622_v13 = vmul.f32 -1.442695, %v895_v30 }
 0x2ca   :  { %1688 = vpow2.f32 %v1621_v29 }
 0x2cb   :  { %1690 = vpow2.f32 %v1622_v13 }
 0x2cc   :  { %v871_v27 = vpop.f32.mrf.mxu2  ;;  %v891_v28 = vpop.f32.mrf.mxu3 }
 0x2cd   :  { %v896_v24 = vadd.f32 %v871_v27, %v3121_v15  ;;  %v897_v19 = vadd.f32 %v891_v28, %v3122_v18 }
 0x2cf   :  { %v1623_v22 = vmul.f32 -1.442695, %v896_v24 }
 0x2d0   :  { %v1689_v25 = vpop.eup %1688 }
 0x2d1   :  { %v1691_v11 = vpop.eup %1690  ;;  %v907_v36 = vadd.f32 1.0, %v1689_v25  ;;  %1692 = vpow2.f32 %v1623_v22 }
 0x2d2   :  { %v908_v16 = vadd.f32 1.0, %v1691_v11 }
 0x2d3   :  { %1694 = vrcp.f32 %v907_v36  ;;  %v921_v24 = vand.u32 2147483648, %v907_v36  ;;  %v919_v22 = vand.u32 2147483647, %v907_v36  ;;  %vm915_vm7 = vweird.f32 %v907_v36 }
 0x2d4   :  { %1696 = vrcp.f32 %v908_v16  ;;  %v936_v15 = vand.u32 2147483648, %v908_v16  ;;  %v934_v23 = vand.u32 2147483647, %v908_v16  ;;  %vm930_vm8 = vweird.f32 %v908_v16 }
 0x2d5   :  { %v922_v18 = vor.u32 1.1754944e-38, %v921_v24  ;;  %vm920_vm11 = vcmp.eq.f32.partialorder %v919_v22, 8.507059e+37 }
 0x2d6   :  { %vm935_vm12 = vcmp.eq.f32.partialorder %v934_v23, 8.507059e+37 }
 0x2d7   :  { %v1693_v33 = vpop.eup %1692 }
 0x2d8   :  { %v909_v35 = vadd.f32 1.0, %v1693_v33 }
 0x2d9   :  { %v1695_v31 = vpop.eup %1694 }
 0x2da   :  { %v1697_v30 = vpop.eup %1696  ;;  %v911_v29 = vmul.f32 %v1695_v31, %v907_v36  ;;  %1698 = vrcp.f32 %v909_v35  ;;  %vm916_vm5 = vweird.f32 %v1695_v31  ;;  %v951_v24 = vand.u32 2147483648, %v909_v35 }
 0x2db   :  { %v926_v32 = vmul.f32 %v1697_v30, %v908_v16  ;;  %1700 = vtanh.f32 %v897_v19  ;;  %vm931_vm6 = vweird.f32 %v1697_v30  ;;  %vm917_vm9 = vmor %vm915_vm7, %vm916_vm5  ;;  %vm945_vm14 = vweird.f32 %v909_v35 }
 0x2dc   :  { %v912_v13 = vsub.f32 1.0, %v911_v29  ;;  %vm932_vm10 = vmor %vm930_vm8, %vm931_vm6  ;;  %v937_v29 = vor.u32 1.1754944e-38, %v936_v15  ;;  %v952_v22 = vor.u32 1.1754944e-38, %v951_v24  ;;  %v3141_v24 = vld [vmem:[#allocation24_spill] sm:$0xff] }
 0x2dd   :  { %v927_v27 = vsub.f32 1.0, %v926_v32 }
 0x2de   :  { %v913_v25 = vmul.f32 %v1695_v31, %v912_v13 }
 0x2df   :  { %v928_v11 = vmul.f32 %v1697_v30, %v927_v27 }
 0x2e0   :  { %v1699_v26 = vpop.eup %1698  ;;  %v914_v33 = vadd.f32 %v1695_v31, %v913_v25 }
 0x2e1   :  { %v941_v28 = vmul.f32 %v1699_v26, %v909_v35  ;;  %v929_v14 = vadd.f32 %v1697_v30, %v928_v11  ;;  %v1701_v19 = vpop.eup %1700  ;;  %vm946_vm13 = vweird.f32 %v1699_v26  ;;  %v3130_v11 = vld [vmem:[#allocation13_spill] sm:$0xff] }
 0x2e2   :  { %v918_v32 = vsel %vm917_vm9, %v1695_v31, %v914_v33  ;;  %v949_v31 = vand.u32 2147483647, %v909_v35  ;;  %vm947_vm15 = vmor %vm945_vm14, %vm946_vm13  ;;  %v3128_v35 = vld [vmem:[#allocation11_spill] sm:$0xff]  ;;  %v3131_v33 = vld [vmem:[#allocation14_spill] sm:$0xff] }
 0x2e3   :  { %v942_v12 = vsub.f32 1.0, %v941_v28  ;;  %v923_v13 = vsel %vm920_vm11, %v922_v18, %v918_v32  ;;  %v933_v10 = vsel %vm932_vm10, %v1697_v30, %v929_v14  ;;  %v3129_v30 = vld [vmem:[#allocation12_spill] sm:$0xff]  ;;  %v3132_v28 = vld [vmem:[#allocation15_spill] sm:$0xff]  ;;  %v3135_v32 = vld [vmem:[#allocation18_spill] sm:$0xff] }
 0x2e4   :  { %v938_v27 = vsel %vm935_vm12, %v937_v29, %v933_v10  ;;  %v957_v9 = vmul.f32 %v1701_v19, %v923_v13  ;;  %vm950_vm0 = vcmp.eq.f32.partialorder %v949_v31, 8.507059e+37  ;;  %v3133_v18 = vld [vmem:[#allocation16_spill] sm:$0xff]  ;;  %v3134_v29 = vld [vmem:[#allocation17_spill] sm:$0xff]  ;;  %v3136_v19 = vld [vmem:[#allocation19_spill] sm:$0xff] }
 0x2e5   :  { %v956_v21 = vmul.f32 %v938_v27, %v2640_v17  ;;  %v943_v25 = vmul.f32 %v1699_v26, %v942_v12  ;;  %v3123_v17 = vld [vmem:[#allocation6_spill] sm:$0xff]  ;;  %v3126_v12 = vld [vmem:[#allocation9_spill] sm:$0xff]  ;;  %v3137_v13 = vld [vmem:[#allocation20_spill] sm:$0xff] }
 0x2e6   :  { %v3138_v27 = vld [vmem:[#allocation21_spill] sm:$0xff] }
 0x2e7   :  { %v2724_v36 = vadd.f32 %v957_v9, %v956_v21  ;;  %v944_v16 = vadd.f32 %v1699_v26, %v943_v25  ;;  %v3124_v21 = vld [vmem:[#allocation7_spill] sm:$0xff]  ;;  %v3125_v9 = vld [vmem:[#allocation8_spill] sm:$0xff]  ;;  %v3139_v25 = vld [vmem:[#allocation22_spill] sm:$0xff] }
 0x2e8   :  { %v3142_v31 = vld [vmem:[#allocation25_spill] sm:$0xff] }
 0x2e9   :  { %1702 = vtanh.f32 %v2724_v36  ;;  %v948_v15 = vsel %vm947_vm15, %v1699_v26, %v944_v16  ;;  %v3127_v26 = vld [vmem:[#allocation10_spill] sm:$0xff]  ;;  %v3140_v16 = vld [vmem:[#allocation23_spill] sm:$0xff] }
 0x2ea   :  { %v953_v23 = vsel %vm950_vm0, %v952_v22, %v948_v15  ;;  %v3143_v15 = vld [vmem:[#allocation26_spill] sm:$0xff]  ;;  %v3144_v22 = vld [vmem:[#allocation27_spill] sm:$0xff] }
 0x2ef   :  { %v1703_v14 = vpop.eup %1702 }
 0x2f0   :  { %v960_v10 = vmul.f32 %v1703_v14, %v953_v23  ;;  %v3145_v14 = vld [vmem:[#allocation28_spill] sm:$0xff]  ;;  %v3146_v23 = vld [vmem:[#allocation29_spill] sm:$0xff] }
 0x2f2   :  { %982 = vmatmul.f32.vlgmr.msrb.gmra.mxu0 %v960_v10  ;;  %1002 = vmatmul.f32.vlgmr.msrb.gmra.mxu1 %v960_v10 }
 0x2f3   :  { %1022 = vmatmul.f32.vlgmr.msrb.gmra.mxu2 %v960_v10  ;;  %1042 = vmatmul.f32.vlgmr.msrb.gmra.mxu3 %v960_v10  ;;  %v3147_v10 = vld [vmem:[#allocation30_spill] sm:$0xff] }
 0x2f4   :  { %1270 = vmatpush.msrb.mxu0 %v2455_v4  ;;  %1290 = vmatpush.msrb.mxu1 %v2458_v37 }
 0x2f5   :  { %1310 = vmatpush.msrb.mxu2 %v2461_v38  ;;  %1330 = vmatpush.msrb.mxu3 %v2464_v39 }
 0x2f6   :  { %1271 = vmatpush.msrb.mxu0 %v2467_v40  ;;  %1291 = vmatpush.msrb.mxu1 %v2470_v41 }
 0x2f7   :  { %1311 = vmatpush.msrb.mxu2 %v2473_v42  ;;  %1331 = vmatpush.msrb.mxu3 %v2476_v43 }
 0x2f8   :  { %1272 = vmatpush.msrb.mxu0 %v2479_v44  ;;  %1292 = vmatpush.msrb.mxu1 %v2482_v45 }
 0x2f9   :  { %1312 = vmatpush.msrb.mxu2 %v2485_v46  ;;  %1332 = vmatpush.msrb.mxu3 %v2488_v48 }
 0x2fa   :  { %1273 = vmatpush.msrb.mxu0 %v2491_v49  ;;  %1293 = vmatpush.msrb.mxu1 %v2494_v50 }
 0x2fb   :  { %1313 = vmatpush.msrb.mxu2 %v2497_v51  ;;  %1333 = vmatpush.msrb.mxu3 %v2500_v8 }
 0x2fc   :  { %1274 = vmatpush.msrb.mxu0 %v2503_v61  ;;  %1294 = vmatpush.msrb.mxu1 %v2506_v5 }
 0x2fd   :  { %1314 = vmatpush.msrb.mxu2 %v2509_v53  ;;  %1334 = vmatpush.msrb.mxu3 %v2512_v57 }
 0x2fe   :  { %1275 = vmatpush.msrb.mxu0 %v2515_v3  ;;  %1295 = vmatpush.msrb.mxu1 %v2518_v7 }
 0x2ff   :  { %1315 = vmatpush.msrb.mxu2 %v2521_v56  ;;  %1335 = vmatpush.msrb.mxu3 %v2524_v34 }
 0x300   :  { %1276 = vmatpush.msrb.mxu0 %v2527_v58  ;;  %1296 = vmatpush.msrb.mxu1 %v2530_v52 }
 0x301   :  { %1316 = vmatpush.msrb.mxu2 %v2533_v59  ;;  %1336 = vmatpush.msrb.mxu3 %v2536_v60 }
 0x302   :  { %1277 = vmatpush.msrb.mxu0 %v2539_v63  ;;  %1297 = vmatpush.msrb.mxu1 %v2542_v0 }
 0x303   :  { %1317 = vmatpush.msrb.mxu2 %v2545_v47  ;;  %1337 = vmatpush.msrb.mxu3 %v2548_v55 }
 0x304   :  { %1278 = vmatpush.msrb.mxu0 %v2551_v54  ;;  %1298 = vmatpush.msrb.mxu1 %v2554_v62 }
 0x305   :  { %1318 = vmatpush.msrb.mxu2 %v2557_v2  ;;  %1338 = vmatpush.msrb.mxu3 %v2560_v6 }
 0x306   :  { %1279 = vmatpush.msrb.mxu0 %v2563_v1  ;;  %1299 = vmatpush.msrb.mxu1 %v2566_v20 }
 0x307   :  { %1319 = vmatpush.msrb.mxu2 %v3123_v17  ;;  %1339 = vmatpush.msrb.mxu3 %v3124_v21 }
 0x308   :  { %1280 = vmatpush.msrb.mxu0 %v3125_v9  ;;  %1300 = vmatpush.msrb.mxu1 %v3126_v12 }
 0x309   :  { %1320 = vmatpush.msrb.mxu2 %v3127_v26  ;;  %1340 = vmatpush.msrb.mxu3 %v3128_v35 }
 0x30a   :  { %1281 = vmatpush.msrb.mxu0 %v3129_v30  ;;  %1301 = vmatpush.msrb.mxu1 %v3130_v11 }
 0x30b   :  { %1321 = vmatpush.msrb.mxu2 %v3131_v33  ;;  %1341 = vmatpush.msrb.mxu3 %v3132_v28 }
 0x30c   :  { %1282 = vmatpush.msrb.mxu0 %v3133_v18  ;;  %1302 = vmatpush.msrb.mxu1 %v3134_v29 }
 0x30d   :  { %1322 = vmatpush.msrb.mxu2 %v3135_v32  ;;  %1342 = vmatpush.msrb.mxu3 %v3136_v19  ;;  %v3149_v19 = vld [vmem:[#allocation44_spill] sm:$0xff]  ;;  %v3150_v32 = vld [vmem:[#allocation45_spill] sm:$0xff] }
 0x30e   :  { %1283 = vmatpush.msrb.mxu0 %v3137_v13  ;;  %1303 = vmatpush.msrb.mxu1 %v3138_v27  ;;  %v3148_v13 = vld [vmem:[#allocation31_spill] sm:$0xff] }
 0x30f   :  { %1323 = vmatpush.msrb.mxu2 %v3139_v25  ;;  %1343 = vmatpush.msrb.mxu3 %v3140_v16 }
 0x310   :  { %1284 = vmatpush.msrb.mxu0 %v3141_v24  ;;  %1304 = vmatpush.msrb.mxu1 %v3142_v31 }
 0x311   :  { %1324 = vmatpush.msrb.mxu2 %v3143_v15  ;;  %1344 = vmatpush.msrb.mxu3 %v3144_v22  ;;  %v3151_v22 = vld [vmem:[#allocation46_spill] sm:$0xff] }
 0x312   :  { %1285 = vmatpush.msrb.mxu0 %v3145_v14  ;;  %1305 = vmatpush.msrb.mxu1 %v3146_v23 }
 0x313   :  { %1325 = vmatpush.msrb.mxu2 %v3147_v10  ;;  %1345 = vmatpush.msrb.mxu3 %v3148_v13 }
 0x36f   :  { %v983_v27 = vpop.f32.mrf.mxu0  ;;  %v1003_v25 = vpop.f32.mrf.mxu1 }
 0x370   :  { %v1046_v16 = vadd.f32 %v983_v27, %v3149_v19  ;;  %v1047_v24 = vadd.f32 %v1003_v25, %v3150_v32  ;;  %v3152_v32 = vld [vmem:[#allocation47_spill] sm:$0xff] }
 0x372   :  { %v1624_v29 = vmul.f32 -1.442695, %v1046_v16  ;;  %v1625_v31 = vmul.f32 -1.442695, %v1047_v24 }
 0x374   :  { %1704 = vpow2.f32 %v1624_v29 }
 0x375   :  { %1706 = vpow2.f32 %v1625_v31 }
 0x376   :  { %v1023_v15 = vpop.f32.mrf.mxu2  ;;  %v1043_v13 = vpop.f32.mrf.mxu3 }
 0x377   :  { %v1048_v18 = vadd.f32 %v1023_v15, %v3151_v22  ;;  %v1049_v25 = vadd.f32 %v1043_v13, %v3152_v32 }
 0x379   :  { %v1626_v14 = vmul.f32 -1.442695, %v1048_v18 }
 0x37a   :  { %v1705_v28 = vpop.eup %1704 }
 0x37b   :  { %v1707_v23 = vpop.eup %1706  ;;  %v1059_v33 = vadd.f32 1.0, %v1705_v28  ;;  %1708 = vpow2.f32 %v1626_v14 }
 0x37c   :  { %v1060_v10 = vadd.f32 1.0, %v1707_v23 }
 0x37d   :  { %1710 = vrcp.f32 %v1059_v33  ;;  %v1073_v18 = vand.u32 2147483648, %v1059_v33  ;;  %v1071_v14 = vand.u32 2147483647, %v1059_v33  ;;  %vm1067_vm3 = vweird.f32 %v1059_v33 }
 0x37e   :  { %1712 = vrcp.f32 %v1060_v10  ;;  %v1088_v22 = vand.u32 2147483648, %v1060_v10  ;;  %v1086_v30 = vand.u32 2147483647, %v1060_v10  ;;  %vm1082_vm4 = vweird.f32 %v1060_v10 }
 0x37f   :  { %v1074_v32 = vor.u32 1.1754944e-38, %v1073_v18  ;;  %vm1072_vm7 = vcmp.eq.f32.partialorder %v1071_v14, 8.507059e+37 }
 0x380   :  { %vm1087_vm8 = vcmp.eq.f32.partialorder %v1086_v30, 8.507059e+37 }
 0x381   :  { %v1709_v11 = vpop.eup %1708 }
 0x382   :  { %v1061_v19 = vadd.f32 1.0, %v1709_v11 }
 0x383   :  { %v1711_v27 = vpop.eup %1710 }
 0x384   :  { %v1713_v16 = vpop.eup %1712  ;;  %v1063_v29 = vmul.f32 %v1711_v27, %v1059_v33  ;;  %1714 = vrcp.f32 %v1061_v19  ;;  %vm1068_vm1 = vweird.f32 %v1711_v27  ;;  %v1103_v18 = vand.u32 2147483648, %v1061_v19 }
 0x385   :  { %v1078_v24 = vmul.f32 %v1713_v16, %v1060_v10  ;;  %1716 = vtanh.f32 %v1049_v25  ;;  %vm1083_vm2 = vweird.f32 %v1713_v16  ;;  %vm1069_vm5 = vmor %vm1067_vm3, %vm1068_vm1  ;;  %vm1097_vm10 = vweird.f32 %v1061_v19 }
 0x386   :  { %v1064_v31 = vsub.f32 1.0, %v1063_v29  ;;  %vm1084_vm6 = vmor %vm1082_vm4, %vm1083_vm2  ;;  %v1089_v29 = vor.u32 1.1754944e-38, %v1088_v22  ;;  %v1104_v14 = vor.u32 1.1754944e-38, %v1103_v18 }
 0x387   :  { %v1079_v15 = vsub.f32 1.0, %v1078_v24 }
 0x388   :  { %v1065_v28 = vmul.f32 %v1711_v27, %v1064_v31 }
 0x389   :  { %v1080_v23 = vmul.f32 %v1713_v16, %v1079_v15 }
 0x38a   :  { %v1715_v35 = vpop.eup %1714  ;;  %v1066_v11 = vadd.f32 %v1711_v27, %v1065_v28 }
 0x38b   :  { %v1093_v13 = vmul.f32 %v1715_v35, %v1061_v19  ;;  %v1081_v26 = vadd.f32 %v1713_v16, %v1080_v23  ;;  %v1717_v25 = vpop.eup %1716  ;;  %vm1098_vm9 = vweird.f32 %v1715_v35 }
 0x38c   :  { %v1070_v24 = vsel %vm1069_vm5, %v1711_v27, %v1066_v11  ;;  %v1101_v27 = vand.u32 2147483647, %v1061_v19  ;;  %vm1099_vm11 = vmor %vm1097_vm10, %vm1098_vm9  ;;  %v3182_v11 = vld [vmem:[#allocation51_spill] sm:$0xff] }
 0x38d   :  { %v1094_v12 = vsub.f32 1.0, %v1093_v13  ;;  %v1075_v31 = vsel %vm1072_vm7, %v1074_v32, %v1070_v24  ;;  %v1085_v9 = vsel %vm1084_vm6, %v1713_v16, %v1081_v26 }
 0x38e   :  { %v1090_v15 = vsel %vm1087_vm8, %v1089_v29, %v1085_v9  ;;  %v1109_v21 = vmul.f32 %v1717_v25, %v1075_v31  ;;  %vm1102_vm12 = vcmp.eq.f32.partialorder %v1101_v27, 8.507059e+37 }
 0x38f   :  { %v1108_v17 = vmul.f32 %v1090_v15, %v2724_v36  ;;  %v1095_v28 = vmul.f32 %v1715_v35, %v1094_v12 }
 0x391   :  { %v2796_v33 = vadd.f32 %v1109_v21, %v1108_v17  ;;  %v1096_v10 = vadd.f32 %v1715_v35, %v1095_v28 }
 0x393   :  { %1718 = vtanh.f32 %v2796_v33  ;;  %v1100_v22 = vsel %vm1099_vm11, %v1715_v35, %v1096_v10 }
 0x394   :  { %v1105_v30 = vsel %vm1102_vm12, %v1104_v14, %v1100_v22 }
 0x399   :  { %v1719_v26 = vpop.eup %1718 }
 0x39a   :  { %v1112_v9 = vmul.f32 %v1719_v26, %v1105_v30 }
 0x39c   :  { %1134 = vmatmul.f32.vlgmr.msra.gmra.mxu0 %v1112_v9  ;;  %1154 = vmatmul.f32.vlgmr.msra.gmra.mxu1 %v1112_v9 }
 0x39d   :  { %1174 = vmatmul.f32.vlgmr.msra.gmra.mxu2 %v1112_v9  ;;  %1194 = vmatmul.f32.vlgmr.msra.gmra.mxu3 %v1112_v9 }
 0x39e   :  { %1422 = vmatpush.msra.mxu0 %v2455_v4  ;;  %1442 = vmatpush.msra.mxu1 %v2458_v37  ;;  %v3153_v4 = vld [vmem:[#allocation6_spill] sm:$0xff]  ;;  %v3154_v37 = vld [vmem:[#allocation7_spill] sm:$0xff] }
 0x39f   :  { %1462 = vmatpush.msra.mxu2 %v2461_v38  ;;  %1482 = vmatpush.msra.mxu3 %v2464_v39  ;;  %v3155_v38 = vld [vmem:[#allocation8_spill] sm:$0xff]  ;;  %v3156_v39 = vld [vmem:[#allocation9_spill] sm:$0xff] }
 0x3a0   :  { %1423 = vmatpush.msra.mxu0 %v2467_v40  ;;  %1443 = vmatpush.msra.mxu1 %v2470_v41  ;;  %v3157_v40 = vld [vmem:[#allocation10_spill] sm:$0xff]  ;;  %v3158_v41 = vld [vmem:[#allocation11_spill] sm:$0xff] }
 0x3a1   :  { %1463 = vmatpush.msra.mxu2 %v2473_v42  ;;  %1483 = vmatpush.msra.mxu3 %v2476_v43  ;;  %v3159_v42 = vld [vmem:[#allocation12_spill] sm:$0xff]  ;;  %v3160_v43 = vld [vmem:[#allocation13_spill] sm:$0xff] }
 0x3a2   :  { %1424 = vmatpush.msra.mxu0 %v2479_v44  ;;  %1444 = vmatpush.msra.mxu1 %v2482_v45  ;;  %v3161_v44 = vld [vmem:[#allocation14_spill] sm:$0xff]  ;;  %v3162_v45 = vld [vmem:[#allocation15_spill] sm:$0xff] }
 0x3a3   :  { %1464 = vmatpush.msra.mxu2 %v2485_v46  ;;  %1484 = vmatpush.msra.mxu3 %v2488_v48  ;;  %v3163_v46 = vld [vmem:[#allocation16_spill] sm:$0xff]  ;;  %v3164_v48 = vld [vmem:[#allocation17_spill] sm:$0xff] }
 0x3a4   :  { %1425 = vmatpush.msra.mxu0 %v2491_v49  ;;  %1445 = vmatpush.msra.mxu1 %v2494_v50  ;;  %v3165_v49 = vld [vmem:[#allocation18_spill] sm:$0xff]  ;;  %v3166_v50 = vld [vmem:[#allocation19_spill] sm:$0xff] }
 0x3a5   :  { %1465 = vmatpush.msra.mxu2 %v2497_v51  ;;  %1485 = vmatpush.msra.mxu3 %v2500_v8  ;;  %v3167_v51 = vld [vmem:[#allocation20_spill] sm:$0xff]  ;;  %v3168_v8 = vld [vmem:[#allocation21_spill] sm:$0xff] }
 0x3a6   :  { %1426 = vmatpush.msra.mxu0 %v2503_v61  ;;  %1446 = vmatpush.msra.mxu1 %v2506_v5  ;;  %v3169_v61 = vld [vmem:[#allocation22_spill] sm:$0xff]  ;;  %v3170_v5 = vld [vmem:[#allocation23_spill] sm:$0xff] }
 0x3a7   :  { %1466 = vmatpush.msra.mxu2 %v2509_v53  ;;  %1486 = vmatpush.msra.mxu3 %v2512_v57  ;;  %v3171_v53 = vld [vmem:[#allocation24_spill] sm:$0xff]  ;;  %v3172_v57 = vld [vmem:[#allocation25_spill] sm:$0xff] }
 0x3a8   :  { %1427 = vmatpush.msra.mxu0 %v2515_v3  ;;  %1447 = vmatpush.msra.mxu1 %v2518_v7  ;;  %v3173_v3 = vld [vmem:[#allocation26_spill] sm:$0xff]  ;;  %v3174_v7 = vld [vmem:[#allocation27_spill] sm:$0xff] }
 0x3a9   :  { %1467 = vmatpush.msra.mxu2 %v2521_v56  ;;  %1487 = vmatpush.msra.mxu3 %v2524_v34  ;;  %v3175_v56 = vld [vmem:[#allocation28_spill] sm:$0xff]  ;;  %v3176_v34 = vld [vmem:[#allocation29_spill] sm:$0xff] }
 0x3aa   :  { %1428 = vmatpush.msra.mxu0 %v2527_v58  ;;  %1448 = vmatpush.msra.mxu1 %v2530_v52  ;;  %v3177_v58 = vld [vmem:[#allocation30_spill] sm:$0xff]  ;;  %v3178_v52 = vld [vmem:[#allocation31_spill] sm:$0xff] }
 0x3ab   :  { %1468 = vmatpush.msra.mxu2 %v2533_v59  ;;  %1488 = vmatpush.msra.mxu3 %v2536_v60 }
 0x3ac   :  { %1429 = vmatpush.msra.mxu0 %v2539_v63  ;;  %1449 = vmatpush.msra.mxu1 %v2542_v0  ;;  %v3179_v63 = vld [vmem:[#allocation48_spill] sm:$0xff] }
 0x3ad   :  { %1469 = vmatpush.msra.mxu2 %v2545_v47  ;;  %1489 = vmatpush.msra.mxu3 %v2548_v55  ;;  %v3180_v47 = vld [vmem:[#allocation49_spill] sm:$0xff] }
 0x3ae   :  { %1430 = vmatpush.msra.mxu0 %v2551_v54  ;;  %1450 = vmatpush.msra.mxu1 %v2554_v62 }
 0x3af   :  { %1470 = vmatpush.msra.mxu2 %v2557_v2  ;;  %1490 = vmatpush.msra.mxu3 %v2560_v6  ;;  %v3181_v6 = vld [vmem:[#allocation50_spill] sm:$0xff] }
 0x3b0   :  { %1431 = vmatpush.msra.mxu0 %v2563_v1  ;;  %1451 = vmatpush.msra.mxu1 %v2566_v20 }
 0x3b1   :  { %1471 = vmatpush.msra.mxu2 %v3153_v4  ;;  %1491 = vmatpush.msra.mxu3 %v3154_v37 }
 0x3b2   :  { %1432 = vmatpush.msra.mxu0 %v3155_v38  ;;  %1452 = vmatpush.msra.mxu1 %v3156_v39 }
 0x3b3   :  { %1472 = vmatpush.msra.mxu2 %v3157_v40  ;;  %1492 = vmatpush.msra.mxu3 %v3158_v41 }
 0x3b4   :  { %1433 = vmatpush.msra.mxu0 %v3159_v42  ;;  %1453 = vmatpush.msra.mxu1 %v3160_v43 }
 0x3b5   :  { %1473 = vmatpush.msra.mxu2 %v3161_v44  ;;  %1493 = vmatpush.msra.mxu3 %v3162_v45 }
 0x3b6   :  { %1434 = vmatpush.msra.mxu0 %v3163_v46  ;;  %1454 = vmatpush.msra.mxu1 %v3164_v48 }
 0x3b7   :  { %1474 = vmatpush.msra.mxu2 %v3165_v49  ;;  %1494 = vmatpush.msra.mxu3 %v3166_v50 }
 0x3b8   :  { %1435 = vmatpush.msra.mxu0 %v3167_v51  ;;  %1455 = vmatpush.msra.mxu1 %v3168_v8 }
 0x3b9   :  { %1475 = vmatpush.msra.mxu2 %v3169_v61  ;;  %1495 = vmatpush.msra.mxu3 %v3170_v5 }
 0x3ba   :  { %1436 = vmatpush.msra.mxu0 %v3171_v53  ;;  %1456 = vmatpush.msra.mxu1 %v3172_v57 }
 0x3bb   :  { %1476 = vmatpush.msra.mxu2 %v3173_v3  ;;  %1496 = vmatpush.msra.mxu3 %v3174_v7  ;;  %v3183_v7 = vld [vmem:[#allocation52_spill] sm:$0xff] }
 0x3bc   :  { %1437 = vmatpush.msra.mxu0 %v3175_v56  ;;  %1457 = vmatpush.msra.mxu1 %v3176_v34  ;;  %v3184_v34 = vld [vmem:[#allocation53_spill] sm:$0xff] }
 0x3bd   :  { %1477 = vmatpush.msra.mxu2 %v3177_v58  ;;  %1497 = vmatpush.msra.mxu3 %v3178_v52 }
 0x419   :  { %v1135_v59 = vpop.f32.mrf.mxu0  ;;  %v1155_v60 = vpop.f32.mrf.mxu1 }
 0x41a   :  { %v1198_v0 = vadd.f32 %v1135_v59, %v3179_v63  ;;  %v1199_v55 = vadd.f32 %v1155_v60, %v3180_v47  ;;  %v3185_v63 = vld [vmem:[#allocation54_spill] sm:$0xff] }
 0x41c   :  { %v1627_v54 = vmul.f32 -1.442695, %v1198_v0  ;;  %v1628_v62 = vmul.f32 -1.442695, %v1199_v55 }
 0x41e   :  { %1720 = vpow2.f32 %v1627_v54 }
 0x41f   :  { %1722 = vpow2.f32 %v1628_v62 }
 0x420   :  { %v1175_v2 = vpop.f32.mrf.mxu2  ;;  %v1195_v35 = vpop.f32.mrf.mxu3 }
 0x421   :  { %v1200_v1 = vadd.f32 %v1175_v2, %v3181_v6  ;;  %v1201_v13 = vadd.f32 %v1195_v35, %v3182_v11 }
 0x423   :  { %v1629_v20 = vmul.f32 -1.442695, %v1200_v1 }
 0x424   :  { %v1721_v36 = vpop.eup %1720 }
 0x425   :  { %v1723_v17 = vpop.eup %1722  ;;  %v1211_v21 = vadd.f32 1.0, %v1721_v36  ;;  %1724 = vpow2.f32 %v1629_v20 }
 0x426   :  { %v1212_v12 = vadd.f32 1.0, %v1723_v17  ;;  %v3186_v17 = vld [vmem:[#allocation55_spill] sm:$0xff] }
 0x427   :  { %1726 = vrcp.f32 %v1211_v21  ;;  %v1225_v15 = vand.u32 2147483648, %v1211_v21  ;;  %v1223_v18 = vand.u32 2147483647, %v1211_v21  ;;  %vm1219_vm15 = vweird.f32 %v1211_v21 }
 0x428   :  { %1728 = vrcp.f32 %v1212_v12  ;;  %v1240_v28 = vand.u32 2147483648, %v1212_v12  ;;  %v1238_v22 = vand.u32 2147483647, %v1212_v12  ;;  %vm1234_vm0 = vweird.f32 %v1212_v12 }
 0x429   :  { %v1226_v9 = vor.u32 1.1754944e-38, %v1225_v15  ;;  %vm1224_vm3 = vcmp.eq.f32.partialorder %v1223_v18, 8.507059e+37 }
 0x42a   :  { %v1241_v37 = vor.u32 1.1754944e-38, %v1240_v28  ;;  %vm1239_vm4 = vcmp.eq.f32.partialorder %v1238_v22, 8.507059e+37 }
 0x42b   :  { %v1725_v19 = vpop.eup %1724 }
 0x42c   :  { %v1213_v16 = vadd.f32 1.0, %v1725_v19 }
 0x42d   :  { %v1727_v23 = vpop.eup %1726 }
 0x42e   :  { %v1729_v32 = vpop.eup %1728  ;;  %v1215_v29 = vmul.f32 %v1727_v23, %v1211_v21  ;;  %1730 = vrcp.f32 %v1213_v16  ;;  %vm1220_vm13 = vweird.f32 %v1727_v23  ;;  %v1255_v50 = vand.u32 2147483648, %v1213_v16 }
 0x42f   :  { %v1230_v24 = vmul.f32 %v1729_v32, %v1212_v12  ;;  %1732 = vtanh.f32 %v1201_v13  ;;  %vm1235_vm14 = vweird.f32 %v1729_v32  ;;  %vm1221_vm1 = vmor %vm1219_vm15, %vm1220_vm13  ;;  %vm1249_vm6 = vweird.f32 %v1213_v16 }
 0x430   :  { %v1216_v25 = vsub.f32 1.0, %v1215_v29  ;;  %vm1236_vm2 = vmor %vm1234_vm0, %vm1235_vm14  ;;  %v1253_v51 = vand.u32 2147483647, %v1213_v16  ;;  %v1256_v61 = vor.u32 1.1754944e-38, %v1255_v50 }
 0x431   :  { %v1231_v31 = vsub.f32 1.0, %v1230_v24 }
 0x432   :  { %v1217_v10 = vmul.f32 %v1727_v23, %v1216_v25  ;;  %vm1254_vm8 = vcmp.eq.f32.partialorder %v1253_v51, 8.507059e+37 }
 0x433   :  { %v1232_v27 = vmul.f32 %v1729_v32, %v1231_v31 }
 0x434   :  { %v1731_v14 = vpop.eup %1730  ;;  %v1218_v26 = vadd.f32 %v1727_v23, %v1217_v10 }
 0x435   :  { %v1245_v30 = vmul.f32 %v1731_v14, %v1213_v16  ;;  %v1233_v4 = vadd.f32 %v1729_v32, %v1232_v27  ;;  %v1733_v39 = vpop.eup %1732  ;;  %vm1250_vm5 = vweird.f32 %v1731_v14 }
 0x436   :  { %v1222_v38 = vsel %vm1221_vm1, %v1727_v23, %v1218_v26  ;;  %vm1251_vm7 = vmor %vm1249_vm6, %vm1250_vm5 }
 0x437   :  { %v1246_v40 = vsub.f32 1.0, %v1245_v30  ;;  %v1227_v41 = vsel %vm1224_vm3, %v1226_v9, %v1222_v38  ;;  %v1237_v42 = vsel %vm1236_vm2, %v1729_v32, %v1233_v4 }
 0x438   :  { %v1242_v43 = vsel %vm1239_vm4, %v1241_v37, %v1237_v42  ;;  %v1261_v44 = vmul.f32 %v1733_v39, %v1227_v41 }
 0x439   :  { %v1260_v45 = vmul.f32 %v1242_v43, %v2796_v33  ;;  %v1247_v46 = vmul.f32 %v1731_v14, %v1246_v40 }
 0x43b   :  { %v2868_v48 = vadd.f32 %v1261_v44, %v1260_v45  ;;  %v1248_v49 = vadd.f32 %v1731_v14, %v1247_v46 }
 0x43d   :  { %1734 = vtanh.f32 %v2868_v48  ;;  %v1252_v8 = vsel %vm1251_vm7, %v1731_v14, %v1248_v49 }
 0x43e   :  { %v1257_v53 = vsel %vm1254_vm8, %v1256_v61, %v1252_v8  ;;  %v3187_v8 = vld [vmem:[#allocation56_spill] sm:$0xff] }
 0x443   :  { %v1735_v5 = vpop.eup %1734 }
 0x444   :  { %v1264_v57 = vmul.f32 %v1735_v5, %v1257_v53  ;;  %v3188_v5 = vld [vmem:[#allocation57_spill] sm:$0xff] }
 0x446   :  { %1286 = vmatmul.f32.vlgmr.msrb.gmra.mxu0 %v1264_v57  ;;  %1306 = vmatmul.f32.vlgmr.msrb.gmra.mxu1 %v1264_v57 }
 0x447   :  { %1326 = vmatmul.f32.vlgmr.msrb.gmra.mxu2 %v1264_v57  ;;  %1346 = vmatmul.f32.vlgmr.msrb.gmra.mxu3 %v1264_v57 }
 0x4c3   :  { %v1287_v33 = vpop.f32.mrf.mxu0  ;;  %v1307_v3 = vpop.f32.mrf.mxu1 }
 0x4c4   :  { %v1350_v56 = vadd.f32 %v1287_v33, %v3183_v7  ;;  %v1351_v58 = vadd.f32 %v1307_v3, %v3184_v34  ;;  %v3189_v7 = vld [vmem:[#allocation58_spill] sm:$0xff] }
 0x4c6   :  { %v1630_v52 = vmul.f32 -1.442695, %v1350_v56  ;;  %v1631_v59 = vmul.f32 -1.442695, %v1351_v58 }
 0x4c8   :  { %1736 = vpow2.f32 %v1630_v52 }
 0x4c9   :  { %1738 = vpow2.f32 %v1631_v59 }
 0x4ca   :  { %v1327_v60 = vpop.f32.mrf.mxu2  ;;  %v1347_v6 = vpop.f32.mrf.mxu3 }
 0x4cb   :  { %v1352_v0 = vadd.f32 %v1327_v60, %v3185_v63  ;;  %v1353_v21 = vadd.f32 %v1347_v6, %v3186_v17 }
 0x4cd   :  { %v1632_v47 = vmul.f32 -1.442695, %v1352_v0 }
 0x4ce   :  { %v1737_v55 = vpop.eup %1736 }
 0x4cf   :  { %v1739_v54 = vpop.eup %1738  ;;  %v1363_v62 = vadd.f32 1.0, %v1737_v55  ;;  %1740 = vpow2.f32 %v1632_v47 }
 0x4d0   :  { %v1364_v2 = vadd.f32 1.0, %v1739_v54  ;;  %v3190_v54 = vld [vmem:[#allocation59_spill] sm:$0xff] }
 0x4d1   :  { %1742 = vrcp.f32 %v1363_v62  ;;  %v1377_v11 = vand.u32 2147483648, %v1363_v62  ;;  %v1375_v29 = vand.u32 2147483647, %v1363_v62  ;;  %vm1371_vm11 = vweird.f32 %v1363_v62 }
 0x4d2   :  { %1744 = vrcp.f32 %v1364_v2  ;;  %v1392_v13 = vand.u32 2147483648, %v1364_v2  ;;  %v1390_v25 = vand.u32 2147483647, %v1364_v2  ;;  %vm1386_vm12 = vweird.f32 %v1364_v2 }
 0x4d3   :  { %v1378_v10 = vor.u32 1.1754944e-38, %v1377_v11  ;;  %vm1376_vm15 = vcmp.eq.f32.partialorder %v1375_v29, 8.507059e+37 }
 0x4d4   :  { %v1393_v27 = vor.u32 1.1754944e-38, %v1392_v13  ;;  %vm1391_vm0 = vcmp.eq.f32.partialorder %v1390_v25, 8.507059e+37 }
 0x4d5   :  { %v1741_v1 = vpop.eup %1740 }
 0x4d6   :  { %v1365_v20 = vadd.f32 1.0, %v1741_v1 }
 0x4d7   :  { %v1743_v36 = vpop.eup %1742 }
 0x4d8   :  { %v1745_v12 = vpop.eup %1744  ;;  %v1367_v35 = vmul.f32 %v1743_v36, %v1363_v62  ;;  %1746 = vrcp.f32 %v1365_v20  ;;  %vm1372_vm9 = vweird.f32 %v1743_v36  ;;  %v1407_v42 = vand.u32 2147483648, %v1365_v20 }
 0x4d9   :  { %v1382_v19 = vmul.f32 %v1745_v12, %v1364_v2  ;;  %1748 = vtanh.f32 %v1353_v21  ;;  %vm1387_vm10 = vweird.f32 %v1745_v12  ;;  %vm1373_vm13 = vmor %vm1371_vm11, %vm1372_vm9  ;;  %vm1401_vm2 = vweird.f32 %v1365_v20 }
 0x4da   :  { %v1368_v16 = vsub.f32 1.0, %v1367_v35  ;;  %vm1388_vm14 = vmor %vm1386_vm12, %vm1387_vm10  ;;  %v1405_v43 = vand.u32 2147483647, %v1365_v20  ;;  %v1408_v45 = vor.u32 1.1754944e-38, %v1407_v42 }
 0x4db   :  { %v1383_v23 = vsub.f32 1.0, %v1382_v19 }
 0x4dc   :  { %v1369_v32 = vmul.f32 %v1743_v36, %v1368_v16  ;;  %vm1406_vm4 = vcmp.eq.f32.partialorder %v1405_v43, 8.507059e+37 }
 0x4dd   :  { %v1384_v24 = vmul.f32 %v1745_v12, %v1383_v23 }
 0x4de   :  { %v1747_v31 = vpop.eup %1746  ;;  %v1370_v15 = vadd.f32 %v1743_v36, %v1369_v32 }
 0x4df   :  { %v1397_v28 = vmul.f32 %v1747_v31, %v1365_v20  ;;  %v1385_v18 = vadd.f32 %v1745_v12, %v1384_v24  ;;  %v1749_v14 = vpop.eup %1748  ;;  %vm1402_vm1 = vweird.f32 %v1747_v31 }
 0x4e0   :  { %v1374_v22 = vsel %vm1373_vm13, %v1743_v36, %v1370_v15  ;;  %vm1403_vm3 = vmor %vm1401_vm2, %vm1402_vm1 }
 0x4e1   :  { %v1398_v26 = vsub.f32 1.0, %v1397_v28  ;;  %v1379_v30 = vsel %vm1376_vm15, %v1378_v10, %v1374_v22  ;;  %v1389_v9 = vsel %vm1388_vm14, %v1745_v12, %v1385_v18 }
 0x4e2   :  { %v1394_v4 = vsel %vm1391_vm0, %v1393_v27, %v1389_v9  ;;  %v1413_v37 = vmul.f32 %v1749_v14, %v1379_v30 }
 0x4e3   :  { %v1412_v38 = vmul.f32 %v1394_v4, %v2868_v48  ;;  %v1399_v39 = vmul.f32 %v1747_v31, %v1398_v26 }
 0x4e5   :  { %v2876_v40 = vadd.f32 %v1413_v37, %v1412_v38  ;;  %v1400_v41 = vadd.f32 %v1747_v31, %v1399_v39 }
 0x4e7   :  { %1750 = vtanh.f32 %v2876_v40  ;;  %v1404_v44 = vsel %vm1403_vm3, %v1747_v31, %v1400_v41 }
 0x4e8   :  { %v1409_v49 = vsel %vm1406_vm4, %v1408_v45, %v1404_v44 }
 0x4ed   :  { %v1751_v46 = vpop.eup %1750 }
 0x4ee   :  { %v1416_v50 = vmul.f32 %v1751_v46, %v1409_v49 }
 0x4f0   :  { %1438 = vmatmul.f32.vlgmr.msra.gmra.mxu0 %v1416_v50  ;;  %1458 = vmatmul.f32.vlgmr.msra.gmra.mxu1 %v1416_v50 }
 0x4f1   :  { %1478 = vmatmul.f32.vlgmr.msra.gmra.mxu2 %v1416_v50  ;;  %1498 = vmatmul.f32.vlgmr.msra.gmra.mxu3 %v1416_v50 }
 0x56d   :  { %v1439_v48 = vpop.f32.mrf.mxu0  ;;  %v1459_v51 = vpop.f32.mrf.mxu1 }
 0x56e   :  { %v1502_v61 = vadd.f32 %v1439_v48, %v3187_v8  ;;  %v1503_v53 = vadd.f32 %v1459_v51, %v3188_v5 }
 0x570   :  { %v1633_v57 = vmul.f32 -1.442695, %v1502_v61  ;;  %v1634_v33 = vmul.f32 -1.442695, %v1503_v53 }
 0x572   :  { %1752 = vpow2.f32 %v1633_v57 }
 0x573   :  { %1754 = vpow2.f32 %v1634_v33 }
 0x574   :  { %v1479_v3 = vpop.f32.mrf.mxu2  ;;  %v1499_v63 = vpop.f32.mrf.mxu3 }
 0x575   :  { %v1504_v56 = vadd.f32 %v1479_v3, %v3189_v7  ;;  %v1505_v62 = vadd.f32 %v1499_v63, %v3190_v54 }
 0x577   :  { %v1635_v34 = vmul.f32 -1.442695, %v1504_v56 }
 0x578   :  { %v1753_v58 = vpop.eup %1752 }
 0x579   :  { %v1755_v52 = vpop.eup %1754  ;;  %v1515_v59 = vadd.f32 1.0, %v1753_v58  ;;  %1756 = vpow2.f32 %v1635_v34 }
 0x57a   :  { %v1516_v60 = vadd.f32 1.0, %v1755_v52 }
 0x57b   :  { %1758 = vrcp.f32 %v1515_v59  ;;  %v1529_v17 = vand.u32 2147483648, %v1515_v59  ;;  %v1527_v35 = vand.u32 2147483647, %v1515_v59  ;;  %vm1523_vm7 = vweird.f32 %v1515_v59 }
 0x57c   :  { %1760 = vrcp.f32 %v1516_v60  ;;  %v1544_v21 = vand.u32 2147483648, %v1516_v60  ;;  %v1542_v16 = vand.u32 2147483647, %v1516_v60  ;;  %vm1538_vm8 = vweird.f32 %v1516_v60 }
 0x57d   :  { %v1530_v32 = vor.u32 1.1754944e-38, %v1529_v17  ;;  %vm1528_vm11 = vcmp.eq.f32.partialorder %v1527_v35, 8.507059e+37 }
 0x57e   :  { %v1545_v24 = vor.u32 1.1754944e-38, %v1544_v21  ;;  %vm1543_vm12 = vcmp.eq.f32.partialorder %v1542_v16, 8.507059e+37 }
 0x57f   :  { %v1757_v0 = vpop.eup %1756 }
 0x580   :  { %v1517_v47 = vadd.f32 1.0, %v1757_v0 }
 0x581   :  { %v1759_v55 = vpop.eup %1758 }
 0x582   :  { %v1761_v2 = vpop.eup %1760  ;;  %v1519_v6 = vmul.f32 %v1759_v55, %v1515_v59  ;;  %1762 = vrcp.f32 %v1517_v47  ;;  %vm1524_vm5 = vweird.f32 %v1759_v55  ;;  %v1559_v9 = vand.u32 2147483648, %v1517_v47 }
 0x583   :  { %v1534_v1 = vmul.f32 %v1761_v2, %v1516_v60  ;;  %1764 = vtanh.f32 %v1505_v62  ;;  %vm1539_vm6 = vweird.f32 %v1761_v2  ;;  %vm1525_vm9 = vmor %vm1523_vm7, %vm1524_vm5  ;;  %vm1553_vm14 = vweird.f32 %v1517_v47 }
 0x584   :  { %v1520_v20 = vsub.f32 1.0, %v1519_v6  ;;  %vm1540_vm10 = vmor %vm1538_vm8, %vm1539_vm6  ;;  %v1557_v4 = vand.u32 2147483647, %v1517_v47  ;;  %v1560_v38 = vor.u32 1.1754944e-38, %v1559_v9 }
 0x585   :  { %v1535_v36 = vsub.f32 1.0, %v1534_v1 }
 0x586   :  { %v1521_v12 = vmul.f32 %v1759_v55, %v1520_v20  ;;  %vm1558_vm0 = vcmp.eq.f32.partialorder %v1557_v4, 8.507059e+37 }
 0x587   :  { %v1536_v19 = vmul.f32 %v1761_v2, %v1535_v36 }
 0x588   :  { %v1763_v23 = vpop.eup %1762  ;;  %v1522_v11 = vadd.f32 %v1759_v55, %v1521_v12 }
 0x589   :  { %v1549_v13 = vmul.f32 %v1763_v23, %v1517_v47  ;;  %v1537_v29 = vadd.f32 %v1761_v2, %v1536_v19  ;;  %v1765_v31 = vpop.eup %1764  ;;  %vm1554_vm13 = vweird.f32 %v1763_v23 }
 0x58a   :  { %v1526_v25 = vsel %vm1525_vm9, %v1759_v55, %v1522_v11  ;;  %vm1555_vm15 = vmor %vm1553_vm14, %vm1554_vm13 }
 0x58b   :  { %v1550_v15 = vsub.f32 1.0, %v1549_v13  ;;  %v1531_v28 = vsel %vm1528_vm11, %v1530_v32, %v1526_v25  ;;  %v1541_v10 = vsel %vm1540_vm10, %v1761_v2, %v1537_v29 }
 0x58c   :  { %v1546_v18 = vsel %vm1543_vm12, %v1545_v24, %v1541_v10  ;;  %v1565_v27 = vmul.f32 %v1765_v31, %v1531_v28 }
 0x58d   :  { %v1551_v22 = vmul.f32 %v1763_v23, %v1550_v15  ;;  %v1564_v14 = vmul.f32 %v1546_v18, %v2876_v40 }
 0x58f   :  { %v1566_v26 = vadd.f32 %v1565_v27, %v1564_v14  ;;  %v1552_v30 = vadd.f32 %v1763_v23, %v1551_v22 }
 0x591   :  { %1766 = vtanh.f32 %v1566_v26  ;;  %1570 = vst [vmem:[%s2895_s5] sm:$0xff] %v1566_v26  ;;  %v1556_v37 = vsel %vm1555_vm15, %v1763_v23, %v1552_v30 }
 0x592   :  { %v1561_v41 = vsel %vm1558_vm0, %v1560_v38, %v1556_v37 }
 0x597   :  { %v1767_v39 = vpop.eup %1766 }
 0x598   :  { %v1568_v42 = vmul.f32 %v1767_v39, %v1561_v41 }
 0x59a   :  { %1569 = vst [vmem:[%s2894_s4] sm:$0xff] %v1568_v42 }
 0x59b   :  { %1579 = vsyncpa [#allocation4], 1 }

</bundles_post_ra>
